<compile_context>
chip_gen: v5e
topology: v5e:2x2
jax: 0.10.0
libtpu: 0.0.40
codegen_flags: <defaults>
</compile_context>

<pallas_src>
import jax
import jax.numpy as jnp
from jax import lax
from jax.experimental import pallas as pl
from jax.experimental.pallas import tpu as pltpu

LN_EPS = 1e-5  # torch nn.LayerNorm default


def _gene_encoder_kernel(ids_ref, table_ref, gamma_ref, beta_ref, o_ref):
    # ids_ref:   (TB, 1) int32  -- token ids for this tile (streamed)
    # table_ref: (V, D)         -- full embedding table (resident)
    # gamma/beta:(1, D)         -- LayerNorm affine params (resident)
    # o_ref:     (TB, D)
    tb = ids_ref.shape[0]
    v = table_ref.shape[0]
    d = o_ref.shape[-1]
    inv_d = jnp.float32(1.0 / d)

    # Embedding lookup as a one-hot matmul (exact row selection, MXU).
    onehot = ids_ref[...] == lax.broadcasted_iota(jnp.int32, (tb, v), 1)
    h = jnp.dot(onehot.astype(table_ref.dtype), table_ref[...],
                preferred_element_type=jnp.float32)            # (TB, D) f32

    # LayerNorm over the feature axis, single-pass stats in f32.
    s = jnp.sum(h, axis=-1, keepdims=True)
    ss = jnp.sum(h * h, axis=-1, keepdims=True)
    mu = s * inv_d
    var = jnp.maximum(ss * inv_d - mu * mu, 0.0)
    h = (h - mu) * lax.rsqrt(var + LN_EPS)
    o_ref[...] = (h * gamma_ref[...] + beta_ref[...]).astype(o_ref.dtype)


def init_gene_encoder_params(key, num_embeddings, embedding_dim, padding_idx=None):
    table = jax.random.normal(key, (num_embeddings, embedding_dim), jnp.float32)
    if padding_idx is not None:
        # torch's nn.Embedding zeroes the padding row; forward is a plain lookup.
        table = table.at[padding_idx].set(0.0)
    return {
        "table": table,
        "gamma": jnp.ones((embedding_dim,), jnp.float32),
        "beta": jnp.zeros((embedding_dim,), jnp.float32),
    }


def gene_encoder_forward(ids, params, *, token_tile=256):
    """ids: int [batch, seq] -> embeddings [batch, seq, embedding_dim]."""
    table = params["table"]
    v, d = table.shape
    gamma = params["gamma"].reshape(1, d)
    beta = params["beta"].reshape(1, d)

    b, s = ids.shape
    n = b * s
    # Keep the tile a multiple of 8 sublanes and no larger than the (padded)
    # token count, so tiny inputs don't force a huge padded grid step.
    token_tile = max(8, min(token_tile, ((n + 7) // 8) * 8))
    n_pad = (-n) % token_tile
    ids_flat = ids.reshape(n).astype(jnp.int32)
    if n_pad:
        ids_flat = jnp.concatenate([ids_flat, jnp.zeros((n_pad,), jnp.int32)])
    n_total = n + n_pad
    ids_col = ids_flat.reshape(n_total, 1)

    out = pl.pallas_call(
        _gene_encoder_kernel,
        out_shape=jax.ShapeDtypeStruct((n_total, d), table.dtype),
        grid_spec=pltpu.PrefetchScalarGridSpec(
            num_scalar_prefetch=0,
            grid=(n_total // token_tile,),
            in_specs=[
                pl.BlockSpec((token_tile, 1), lambda i: (i, 0)),  # ids: streamed
                pl.BlockSpec((v, d), lambda i: (0, 0)),           # table: resident
                pl.BlockSpec((1, d), lambda i: (0, 0)),           # gamma: resident
                pl.BlockSpec((1, d), lambda i: (0, 0)),           # beta: resident
            ],
            out_specs=pl.BlockSpec((token_tile, d), lambda i: (i, 0)),
        ),
        compiler_params=pltpu.CompilerParams(
            dimension_semantics=("parallel",),     # v7x: shard grid over 2 TCs
            vmem_limit_bytes=32 * 1024 * 1024,     # safe on v5e/v6e/v7x
        ),
    )(ids_col, table, gamma, beta)
    return out[:n].reshape(b, s, d)


def gene_encoder_reference(ids, params):
    """Pure-JAX reference matching the PyTorch forward."""
    emb = params["table"][ids]
    mu = jnp.mean(emb, axis=-1, keepdims=True)
    var = jnp.mean((emb - mu) ** 2, axis=-1, keepdims=True)
    h = (emb - mu) / jnp.sqrt(var + LN_EPS)
    return h * params["gamma"] + params["beta"]


if __name__ == "__main__":
    batch, seq, vocab, d_model = 4, 64, 512, 128
    padding_idx = 0

    key = jax.random.PRNGKey(0)
    k_ids, k_params = jax.random.split(key)
    ids = jax.random.randint(k_ids, (batch, seq), 0, vocab, jnp.int32)
    ids = ids.at[:, 0].set(padding_idx)  # exercise the zeroed padding row
    params = init_gene_encoder_params(k_params, vocab, d_model, padding_idx)

    out = gene_encoder_forward(ids, params)
    out = jax.block_until_ready(out)

    ref = gene_encoder_reference(ids, params)
    assert out.shape == (batch, seq, d_model)
    assert jnp.allclose(out, ref, atol=1e-4, rtol=1e-4), "mismatch vs reference"

    print("KERNEL_OK")
</pallas_src>

<mosaic_0001>
module attributes {stable_mosaic.version = 11 : i64} {
  func.func @_gene_encoder_kernel(%arg0: i32, %arg1: memref<256x1xi32, #tpu.memory_space<vmem>>, %arg2: memref<512x128xf32, #tpu.memory_space<vmem>>, %arg3: memref<1x128xf32, #tpu.memory_space<vmem>>, %arg4: memref<1x128xf32, #tpu.memory_space<vmem>>, %arg5: memref<256x128xf32, #tpu.memory_space<vmem>>) attributes {dimension_semantics = [#tpu.dimension_semantics<parallel>], iteration_bounds = array<i64: 1>, scalar_prefetch = 0 : i64, scratch_operands = 0 : i64, tpu.core_type = #tpu.core_type<tc>, window_params = [{transform_indices = @transform_0, window_bounds = array<i64: 256, 1>}, {pipeline_mode = #tpu.pipeline_mode<synchronous>, transform_indices = @transform_1, window_bounds = array<i64: 512, 128>}, {pipeline_mode = #tpu.pipeline_mode<synchronous>, transform_indices = @transform_2, window_bounds = array<i64: 1, 128>}, {pipeline_mode = #tpu.pipeline_mode<synchronous>, transform_indices = @transform_3, window_bounds = array<i64: 1, 128>}, {transform_indices = @transform_4, window_bounds = array<i64: 256, 128>}]} {
    %c0 = arith.constant 0 : index
    %c0_0 = arith.constant 0 : index
    %0 = vector.load %arg1[%c0, %c0_0] : memref<256x1xi32, #tpu.memory_space<vmem>>, vector<256x1xi32>
    %1 = tpu.iota {dimensions = array<i32: 1>} : vector<256x512xi32>
    %2 = vector.broadcast %0 : vector<256x1xi32> to vector<256x512xi32>
    %3 = arith.cmpi eq, %2, %1 : vector<256x512xi32>
    %4 = arith.extui %3 : vector<256x512xi1> to vector<256x512xi32>
    %5 = arith.sitofp %4 : vector<256x512xi32> to vector<256x512xf32>
    %c0_1 = arith.constant 0 : index
    %c0_2 = arith.constant 0 : index
    %6 = vector.load %arg2[%c0_1, %c0_2] : memref<512x128xf32, #tpu.memory_space<vmem>>, vector<512x128xf32>
    %cst = arith.constant dense<0.000000e+00> : vector<256x128xf32>
    %7 = tpu.matmul %5, %6, %cst {dimension_numbers = #tpu.dot_dimension_numbers<[1], [0], [0], [1], [0, 0, 1, 1], [], []>} : vector<256x512xf32>, vector<512x128xf32>, vector<256x128xf32> -> vector<256x128xf32>
    %cst_3 = arith.constant dense<0.000000e+00> : vector<256xf32>
    %8 = vector.multi_reduction <add>, %7, %cst_3 [1] : vector<256x128xf32> to vector<256xf32>
    %9 = vector.shape_cast %8 : vector<256xf32> to vector<256x1xf32>
    %10 = arith.mulf %7, %7 : vector<256x128xf32>
    %cst_4 = arith.constant dense<0.000000e+00> : vector<256xf32>
    %11 = vector.multi_reduction <add>, %10, %cst_4 [1] : vector<256x128xf32> to vector<256xf32>
    %12 = vector.shape_cast %11 : vector<256xf32> to vector<256x1xf32>
    %cst_5 = arith.constant 7.812500e-03 : f32
    %13 = vector.broadcast %cst_5 : f32 to vector<256x1xf32>
    %14 = arith.mulf %9, %13 : vector<256x1xf32>
    %cst_6 = arith.constant 7.812500e-03 : f32
    %15 = vector.broadcast %cst_6 : f32 to vector<256x1xf32>
    %16 = arith.mulf %12, %15 : vector<256x1xf32>
    %17 = arith.mulf %14, %14 : vector<256x1xf32>
    %18 = arith.subf %16, %17 : vector<256x1xf32>
    %cst_7 = arith.constant 0.000000e+00 : f32
    %19 = vector.broadcast %cst_7 : f32 to vector<256x1xf32>
    %20 = arith.maximumf %18, %19 : vector<256x1xf32>
    %21 = vector.broadcast %14 : vector<256x1xf32> to vector<256x128xf32>
    %22 = arith.subf %7, %21 : vector<256x128xf32>
    %cst_8 = arith.constant 9.99999974E-6 : f32
    %23 = vector.broadcast %cst_8 : f32 to vector<256x1xf32>
    %24 = arith.addf %20, %23 : vector<256x1xf32>
    %25 = math.rsqrt %24 : vector<256x1xf32>
    %26 = vector.broadcast %25 : vector<256x1xf32> to vector<256x128xf32>
    %27 = arith.mulf %22, %26 : vector<256x128xf32>
    %c0_9 = arith.constant 0 : index
    %c0_10 = arith.constant 0 : index
    %28 = vector.load %arg3[%c0_9, %c0_10] : memref<1x128xf32, #tpu.memory_space<vmem>>, vector<1x128xf32>
    %29 = vector.broadcast %28 : vector<1x128xf32> to vector<256x128xf32>
    %30 = arith.mulf %27, %29 : vector<256x128xf32>
    %c0_11 = arith.constant 0 : index
    %c0_12 = arith.constant 0 : index
    %31 = vector.load %arg4[%c0_11, %c0_12] : memref<1x128xf32, #tpu.memory_space<vmem>>, vector<1x128xf32>
    %32 = vector.broadcast %31 : vector<1x128xf32> to vector<256x128xf32>
    %33 = arith.addf %30, %32 : vector<256x128xf32>
    %c0_13 = arith.constant 0 : index
    %c0_14 = arith.constant 0 : index
    %34 = vector.load %arg5[%c0_13, %c0_14] : memref<256x128xf32, #tpu.memory_space<vmem>>, vector<256x128xf32>
    tpu.vector_store %arg5[%c0_13, %c0_14], %33 {strides = array<i32>} : memref<256x128xf32, #tpu.memory_space<vmem>>, vector<256x128xf32>,
    return
  }
  func.func @transform_0(%arg0: i32) -> (i32, i32) {
    %c0_i32 = arith.constant 0 : i32
    %c0_i32_0 = arith.constant 0 : i32
    return %arg0, %c0_i32 : i32, i32
  }
  func.func @transform_1(%arg0: i32) -> (i32, i32) {
    %c0_i32 = arith.constant 0 : i32
    %c0_i32_0 = arith.constant 0 : i32
    %c0_i32_1 = arith.constant 0 : i32
    return %c0_i32, %c0_i32_0 : i32, i32
  }
  func.func @transform_2(%arg0: i32) -> (i32, i32) {
    %c0_i32 = arith.constant 0 : i32
    %c0_i32_0 = arith.constant 0 : i32
    %c0_i32_1 = arith.constant 0 : i32
    return %c0_i32, %c0_i32_0 : i32, i32
  }
  func.func @transform_3(%arg0: i32) -> (i32, i32) {
    %c0_i32 = arith.constant 0 : i32
    %c0_i32_0 = arith.constant 0 : i32
    %c0_i32_1 = arith.constant 0 : i32
    return %c0_i32, %c0_i32_0 : i32, i32
  }
  func.func @transform_4(%arg0: i32) -> (i32, i32) {
    %c0_i32 = arith.constant 0 : i32
    %c0_i32_0 = arith.constant 0 : i32
    return %arg0, %c0_i32 : i32, i32
  }
}

</mosaic_0001>

<bundles_post_ra>
// kernel: tpu_custom_call.1
= control target key start
LH: loop header
LB: loop body
LE: loop exit
PB: predicated region body
PF: predicated region fallthrough
CT: control target
= control target key end

     0   :  { %9 = vsyncpa [#allocation3], 0  ;;  %s3220_s0 = inlined_call_operand.vmem [shape: s32[256,1], index: 0, kind: input, shape index: {}]   ;;  %s3221_s1 = inlined_call_operand.hbm [shape: f32[512,128], index: 1, kind: input, shape index: {}]   ;;  %s3222_s2 = inlined_call_operand.vmem [shape: f32[1,128], index: 2, kind: input, shape index: {}]   ;;  %s3223_s3 = inlined_call_operand.vmem [shape: f32[1,128], index: 3, kind: input, shape index: {}]   ;;  %s3224_s4 = inlined_call_operand.hbm [shape: f32[256,128], index: 4, kind: output, shape index: {}]  }
   0x1   :  { %10 = vsyncpa [#allocation4], 0  ;;  %s17_s17 = sshll.u32 %s3221_s1, 4  ;;  %s2311_s18 = smov [#allocation2]   ;;  %s18_s17 = int_to_ptr.hbm [resolvable:$true] %s17_s17 }
   0x2   :  { %s19_s19 = sshll.u32 %s2311_s18, 4  ;;  %s2312_s20 = smov 128   ;;  %s20_s19 = int_to_ptr.vmem [resolvable:$true] %s19_s19 }
   0x3   :  { %s2313_s21 = smov 8  }
   0x4   :  { %25 = dma.hbm_to_vmem [thread:$0]  %s18_s17, 8192, %s20_s19, [#allocation3], %s2312_s20, %s2312_s20, %s2313_s21  }
   0x5   :  { %2307 = dma.done.wait [#allocation3], 8192  }
   0x6   :  { %2308 = vsyncadd [#allocation3], 4294959104  ;;  %v2314_v0 = vmov 0   ;;  %v38_v1 = vld [vmem:[%s3220_s0 + $0x20] sm:$0xff]  ;;  %v36_v2 = vld [vmem:[%s3220_s0 + $0x10] sm:$0xff]  ;;  %s1913_s18 = sshll.u32 %s3224_s4, 4  ;;  %s1914_s18 = int_to_ptr.hbm [resolvable:$true] %s1913_s18 }
   0x7   :  { %2190 = vset.pattern.permute.xlu2 %v2314_v0  ;;  %2189 = vset.pattern.permute.xlu1 %v2314_v0  ;;  %v34_v3 = vld [vmem:[%s3220_s0] sm:$0xff]  ;;  %v39_v4 = vld [vmem:[%s3220_s0 + $0x28] sm:$0xff]  ;;  %v37_v5 = vld [vmem:[%s3220_s0 + $0x18] sm:$0xff] }
   0x8   :  { %2188 = vset.pattern.permute.xlu0 %v2314_v0  ;;  %84 = vperm.xlu2 %2190, %v38_v1   ;;  %v35_v6 = vld [vmem:[%s3220_s0 + $0x8] sm:$0xff]  ;;  %v42_v7 = vld [vmem:[%s3220_s0 + $0x40] sm:$0xff]  ;;  %v41_v8 = vld [vmem:[%s3220_s0 + $0x38] sm:$0xff] }
   0x9   :  { %78 = vperm.xlu1 %2189, %v36_v2   ;;  %72 = vperm.xlu0 %2188, %v34_v3   ;;  %v40_v9 = vld [vmem:[%s3220_s0 + $0x30] sm:$0xff]  ;;  %v45_v10 = vld [vmem:[%s3220_s0 + $0x58] sm:$0xff]  ;;  %v43_v12 = vld [vmem:[%s3220_s0 + $0x48] sm:$0xff] }
   0xa   :  { %v44_v11 = vld [vmem:[%s3220_s0 + $0x50] sm:$0xff]  ;;  %v47_v14 = vld [vmem:[%s3220_s0 + $0x68] sm:$0xff]  ;;  %v46_v15 = vld [vmem:[%s3220_s0 + $0x60] sm:$0xff] }
   0xb   :  { %v48_v13 = vld [vmem:[%s3220_s0 + $0x70] sm:$0xff]  ;;  %v51_v16 = vld [vmem:[%s3220_s0 + $0x88] sm:$0xff]  ;;  %v50_v17 = vld [vmem:[%s3220_s0 + $0x80] sm:$0xff] }
   0xc   :  { %v49_v18 = vld [vmem:[%s3220_s0 + $0x78] sm:$0xff]  ;;  %v54_v19 = vld [vmem:[%s3220_s0 + $0xa0] sm:$0xff]  ;;  %v52_v21 = vld [vmem:[%s3220_s0 + $0x90] sm:$0xff] }
   0xd   :  { %v53_v20 = vld [vmem:[%s3220_s0 + $0x98] sm:$0xff]  ;;  %v565_v26 = vld [vmem:[#allocation2 + $0x70] sm:$0xff]  ;;  %v564_v30 = vld [vmem:[#allocation2 + $0x68] sm:$0xff] }
   0xe   :  { %v566_v22 = vld [vmem:[#allocation2 + $0x78] sm:$0xff]  ;;  %v581_v27 = vld [vmem:[#allocation2 + $0xf0] sm:$0xff]  ;;  %v580_v31 = vld [vmem:[#allocation2 + $0xe8] sm:$0xff] }
   0xf   :  { %v582_v23 = vld [vmem:[#allocation2 + $0xf8] sm:$0xff]  ;;  %615 = vmatpush.msra.mxu0 %v566_v22  ;;  %v597_v28 = vld [vmem:[#allocation2 + $0x170] sm:$0xff]  ;;  %v596_v32 = vld [vmem:[#allocation2 + $0x168] sm:$0xff] }
  0x10   :  { %87 = vperm.xlu2 %2190, %v39_v4   ;;  %v598_v24 = vld [vmem:[#allocation2 + $0x178] sm:$0xff]  ;;  %728 = vmatpush.msra.mxu1 %v582_v23  ;;  %v613_v29 = vld [vmem:[#allocation2 + $0x1f0] sm:$0xff]  ;;  %v612_v33 = vld [vmem:[#allocation2 + $0x1e8] sm:$0xff] }
  0x11   :  { %81 = vperm.xlu1 %2189, %v37_v5   ;;  %75 = vperm.xlu0 %2188, %v35_v6   ;;  %v614_v25 = vld [vmem:[#allocation2 + $0x1f8] sm:$0xff]  ;;  %v56_v35 = vld [vmem:[%s3220_s0 + $0xb0] sm:$0xff]  ;;  %v55_v36 = vld [vmem:[%s3220_s0 + $0xa8] sm:$0xff] }
  0x12   :  { %841 = vmatpush.msra.mxu2 %v598_v24  ;;  %954 = vmatpush.msra.mxu3 %v614_v25  ;;  %v57_v34 = vld [vmem:[%s3220_s0 + $0xb8] sm:$0xff]  ;;  %v563_v37 = vld [vmem:[#allocation2 + $0x60] sm:$0xff]  ;;  %v561_v45 = vld [vmem:[#allocation2 + $0x50] sm:$0xff] }
  0x13   :  { %616 = vmatpush.msra.mxu0 %v565_v26  ;;  %729 = vmatpush.msra.mxu1 %v581_v27  ;;  %v579_v38 = vld [vmem:[#allocation2 + $0xe0] sm:$0xff]  ;;  %v562_v41 = vld [vmem:[#allocation2 + $0x58] sm:$0xff]  ;;  %v60_v46 = vld [vmem:[%s3220_s0 + $0xd0] sm:$0xff] }
  0x14   :  { %842 = vmatpush.msra.mxu2 %v597_v28  ;;  %955 = vmatpush.msra.mxu3 %v613_v29  ;;  %v595_v39 = vld [vmem:[#allocation2 + $0x160] sm:$0xff]  ;;  %v578_v42 = vld [vmem:[#allocation2 + $0xd8] sm:$0xff]  ;;  %v59_v47 = vld [vmem:[%s3220_s0 + $0xc8] sm:$0xff] }
  0x15   :  { %617 = vmatpush.msra.mxu0 %v564_v30  ;;  %730 = vmatpush.msra.mxu1 %v580_v31  ;;  %v611_v40 = vld [vmem:[#allocation2 + $0x1e0] sm:$0xff]  ;;  %v594_v43 = vld [vmem:[#allocation2 + $0x158] sm:$0xff]  ;;  %v577_v48 = vld [vmem:[#allocation2 + $0xd0] sm:$0xff] }
  0x16   :  { %843 = vmatpush.msra.mxu2 %v596_v32  ;;  %956 = vmatpush.msra.mxu3 %v612_v33  ;;  %v610_v44 = vld [vmem:[#allocation2 + $0x1d8] sm:$0xff]  ;;  %v58_v49 = vld [vmem:[%s3220_s0 + $0xc0] sm:$0xff]  ;;  %v593_v50 = vld [vmem:[#allocation2 + $0x150] sm:$0xff]  ;;  %v66_v33 = vlaneseq }
  0x17   :  { %618 = vmatpush.msra.mxu0 %v563_v37  ;;  %731 = vmatpush.msra.mxu1 %v579_v38  ;;  %v609_v51 = vld [vmem:[#allocation2 + $0x1d0] sm:$0xff]  ;;  %v560_v52 = vld [vmem:[#allocation2 + $0x48] sm:$0xff]  ;;  %v559_v56 = vld [vmem:[#allocation2 + $0x40] sm:$0xff] }
  0x18   :  { %96 = vperm.xlu2 %2190, %v42_v7   ;;  %844 = vmatpush.msra.mxu2 %v595_v39  ;;  %v576_v53 = vld [vmem:[#allocation2 + $0xc8] sm:$0xff]  ;;  %v575_v57 = vld [vmem:[#allocation2 + $0xc0] sm:$0xff]  ;;  %v558_v60 = vld [vmem:[#allocation2 + $0x38] sm:$0xff]  ;;  %v2315_v39 = vmov 1.0  }
  0x19   :  { %93 = vperm.xlu1 %2189, %v41_v8   ;;  %90 = vperm.xlu0 %2188, %v40_v9   ;;  %v592_v54 = vld [vmem:[#allocation2 + $0x148] sm:$0xff]  ;;  %v591_v58 = vld [vmem:[#allocation2 + $0x140] sm:$0xff]  ;;  %v574_v61 = vld [vmem:[#allocation2 + $0xb8] sm:$0xff] }
  0x1a   :  { %957 = vmatpush.msra.mxu3 %v611_v40  ;;  %619 = vmatpush.msra.mxu0 %v562_v41  ;;  %v608_v55 = vld [vmem:[#allocation2 + $0x1c8] sm:$0xff]  ;;  %v607_v59 = vld [vmem:[#allocation2 + $0x1c0] sm:$0xff]  ;;  %v590_v62 = vld [vmem:[#allocation2 + $0x138] sm:$0xff] }
  0x1b   :  { %732 = vmatpush.msra.mxu1 %v578_v42  ;;  %845 = vmatpush.msra.mxu2 %v594_v43  ;;  %v63_v63 = vld [vmem:[%s3220_s0 + $0xe8] sm:$0xff]  ;;  %v62_v0 = vld [vmem:[%s3220_s0 + $0xe0] sm:$0xff]  ;;  %v61_v1 = vld [vmem:[%s3220_s0 + $0xd8] sm:$0xff] }
  0x1c   :  { %958 = vmatpush.msra.mxu3 %v610_v44  ;;  %620 = vmatpush.msra.mxu0 %v561_v45  ;;  %v606_v2 = vld [vmem:[#allocation2 + $0x1b8] sm:$0xff]  ;;  %v557_v3 = vld [vmem:[#allocation2 + $0x30] sm:$0xff]  ;;  %v556_v7 = vld [vmem:[#allocation2 + $0x28] sm:$0xff] }
  0x1d   :  { %733 = vmatpush.msra.mxu1 %v577_v48  ;;  %846 = vmatpush.msra.mxu2 %v593_v50  ;;  %v573_v4 = vld [vmem:[#allocation2 + $0xb0] sm:$0xff]  ;;  %v572_v8 = vld [vmem:[#allocation2 + $0xa8] sm:$0xff]  ;;  %v551_v29 = vld [vmem:[#allocation2] sm:$0xff] }
  0x1e   :  { %959 = vmatpush.msra.mxu3 %v609_v51  ;;  %621 = vmatpush.msra.mxu0 %v560_v52  ;;  %v589_v5 = vld [vmem:[#allocation2 + $0x130] sm:$0xff]  ;;  %v588_v9 = vld [vmem:[#allocation2 + $0x128] sm:$0xff]  ;;  %v567_v30 = vld [vmem:[#allocation2 + $0x80] sm:$0xff] }
  0x1f   :  { %734 = vmatpush.msra.mxu1 %v576_v53  ;;  %847 = vmatpush.msra.mxu2 %v592_v54  ;;  %v605_v6 = vld [vmem:[#allocation2 + $0x1b0] sm:$0xff]  ;;  %v552_v25 = vld [vmem:[#allocation2 + $0x8] sm:$0xff]  ;;  %v583_v31 = vld [vmem:[#allocation2 + $0x100] sm:$0xff] }
  0x20   :  { %105 = vperm.xlu2 %2190, %v45_v10   ;;  %960 = vmatpush.msra.mxu3 %v608_v55  ;;  %v604_v10 = vld [vmem:[#allocation2 + $0x1a8] sm:$0xff]  ;;  %v569_v22 = vld [vmem:[#allocation2 + $0x90] sm:$0xff]  ;;  %v599_v32 = vld [vmem:[#allocation2 + $0x180] sm:$0xff] }
  0x21   :  { %102 = vperm.xlu1 %2189, %v44_v11   ;;  %99 = vperm.xlu0 %2188, %v43_v12   ;;  %v555_v11 = vld [vmem:[#allocation2 + $0x20] sm:$0xff]  ;;  %v585_v23 = vld [vmem:[#allocation2 + $0x110] sm:$0xff]  ;;  %v568_v26 = vld [vmem:[#allocation2 + $0x88] sm:$0xff] }
  0x22   :  { %622 = vmatpush.msra.mxu0 %v559_v56  ;;  %735 = vmatpush.msra.mxu1 %v575_v57  ;;  %v571_v12 = vld [vmem:[#allocation2 + $0xa0] sm:$0xff]  ;;  %v601_v24 = vld [vmem:[#allocation2 + $0x190] sm:$0xff]  ;;  %v584_v27 = vld [vmem:[#allocation2 + $0x108] sm:$0xff] }
  0x23   :  { %848 = vmatpush.msra.mxu2 %v591_v58  ;;  %961 = vmatpush.msra.mxu3 %v607_v59  ;;  %v600_v28 = vld [vmem:[#allocation2 + $0x188] sm:$0xff] }
  0x24   :  { %623 = vmatpush.msra.mxu0 %v558_v60  ;;  %736 = vmatpush.msra.mxu1 %v574_v61 }
  0x25   :  { %849 = vmatpush.msra.mxu2 %v590_v62  ;;  %962 = vmatpush.msra.mxu3 %v606_v2 }
  0x26   :  { %624 = vmatpush.msra.mxu0 %v557_v3  ;;  %737 = vmatpush.msra.mxu1 %v573_v4 }
  0x27   :  { %850 = vmatpush.msra.mxu2 %v589_v5  ;;  %963 = vmatpush.msra.mxu3 %v605_v6 }
  0x28   :  { %114 = vperm.xlu2 %2190, %v48_v13   ;;  %625 = vmatpush.msra.mxu0 %v556_v7  ;;  %v587_v13 = vld [vmem:[#allocation2 + $0x120] sm:$0xff] }
  0x29   :  { %111 = vperm.xlu1 %2189, %v47_v14   ;;  %108 = vperm.xlu0 %2188, %v46_v15   ;;  %v603_v14 = vld [vmem:[#allocation2 + $0x1a0] sm:$0xff]  ;;  %v65_v15 = vld [vmem:[%s3220_s0 + $0xf8] sm:$0xff] }
  0x2a   :  { %738 = vmatpush.msra.mxu1 %v572_v8  ;;  %851 = vmatpush.msra.mxu2 %v588_v9 }
  0x2b   :  { %964 = vmatpush.msra.mxu3 %v604_v10  ;;  %626 = vmatpush.msra.mxu0 %v555_v11 }
  0x2c   :  { %739 = vmatpush.msra.mxu1 %v571_v12  ;;  %852 = vmatpush.msra.mxu2 %v587_v13 }
  0x2d   :  { %965 = vmatpush.msra.mxu3 %v603_v14 }
  0x30   :  { %123 = vperm.xlu2 %2190, %v51_v16   ;;  %v554_v16 = vld [vmem:[#allocation2 + $0x18] sm:$0xff] }
  0x31   :  { %120 = vperm.xlu1 %2189, %v50_v17   ;;  %117 = vperm.xlu0 %2188, %v49_v18   ;;  %v64_v17 = vld [vmem:[%s3220_s0 + $0xf0] sm:$0xff]  ;;  %v570_v18 = vld [vmem:[#allocation2 + $0x98] sm:$0xff] }
  0x32   :  { %627 = vmatpush.msra.mxu0 %v554_v16  ;;  %740 = vmatpush.msra.mxu1 %v570_v18 }
  0x34   :  { %741 = vmatpush.msra.mxu1 %v569_v22 }
  0x36   :  { %742 = vmatpush.msra.mxu1 %v568_v26 }
  0x38   :  { %132 = vperm.xlu2 %2190, %v54_v19   ;;  %v586_v19 = vld [vmem:[#allocation2 + $0x118] sm:$0xff]  ;;  %743 = vmatpush.msra.mxu1 %v567_v30 }
  0x39   :  { %129 = vperm.xlu1 %2189, %v53_v20   ;;  %126 = vperm.xlu0 %2188, %v52_v21   ;;  %v602_v20 = vld [vmem:[#allocation2 + $0x198] sm:$0xff]  ;;  %v553_v21 = vld [vmem:[#allocation2 + $0x10] sm:$0xff] }
  0x3a   :  { %853 = vmatpush.msra.mxu2 %v586_v19  ;;  %966 = vmatpush.msra.mxu3 %v602_v20 }
  0x3b   :  { %628 = vmatpush.msra.mxu0 %v553_v21 }
  0x3c   :  { %854 = vmatpush.msra.mxu2 %v585_v23  ;;  %967 = vmatpush.msra.mxu3 %v601_v24 }
  0x3d   :  { %629 = vmatpush.msra.mxu0 %v552_v25 }
  0x3e   :  { %855 = vmatpush.msra.mxu2 %v584_v27  ;;  %968 = vmatpush.msra.mxu3 %v600_v28 }
  0x3f   :  { %630 = vmatpush.msra.mxu0 %v551_v29 }
  0x40   :  { %141 = vperm.xlu2 %2190, %v57_v34   ;;  %856 = vmatpush.msra.mxu2 %v583_v31  ;;  %v2444_v34 = vand.u32 127, %v66_v33 }
  0x41   :  { %138 = vperm.xlu1 %2189, %v56_v35   ;;  %135 = vperm.xlu0 %2188, %v55_v36  }
  0x42   :  { %969 = vmatpush.msra.mxu3 %v599_v32  ;;  %v2447_v35 = vadd.s32 128, %v2444_v34  ;;  %v2450_v36 = vadd.s32 256, %v2444_v34  ;;  %v2453_v37 = vadd.s32 384, %v2444_v34 }
  0x48   :  { %150 = vperm.xlu2 %2190, %v60_v46  }
  0x49   :  { %147 = vperm.xlu1 %2189, %v59_v47   ;;  %144 = vperm.xlu0 %2188, %v58_v49  }
  0x50   :  { %159 = vperm.xlu2 %2190, %v63_v63  }
  0x51   :  { %156 = vperm.xlu1 %2189, %v62_v0   ;;  %153 = vperm.xlu0 %2188, %v61_v1  }
  0x59   :  { %165 = vperm.xlu1 %2189, %v65_v15   ;;  %162 = vperm.xlu0 %2188, %v64_v17  }
  0x62   :  { %v85_v43 = vpop.permute.xlu2 %84 }
  0x6a   :  { %v88_v44 = vpop.permute.xlu2 %87 }
  0x72   :  { %v97_v47 = vpop.permute.xlu2 %96 }
  0x7a   :  { %v106_v50 = vpop.permute.xlu2 %105 }
  0x7b   :  { %v73_v38 = vpop.permute.xlu0 %72  ;;  %v79_v41 = vpop.permute.xlu1 %78 }
  0x7c   :  { %vm167_vm0 = vcmp.eq.s32.totalorder %v73_v38, %v2444_v34  ;;  %vm168_vm1 = vcmp.eq.s32.totalorder %v73_v38, %v2447_v35  ;;  %vm169_vm2 = vcmp.eq.s32.totalorder %v73_v38, %v2450_v36  ;;  %vm170_vm3 = vcmp.eq.s32.totalorder %v73_v38, %v2453_v37 }
  0x7d   :  { %2054 = vmatmul.msk.f32.vlgmr.msra.gmra.mxu0 %vm167_vm0, %v2315_v39  ;;  %2086 = vmatmul.msk.f32.vlgmr.msra.gmra.mxu1 %vm168_vm1, %v2315_v39  ;;  %vm175_vm8 = vcmp.eq.s32.totalorder %v79_v41, %v2444_v34  ;;  %vm176_vm9 = vcmp.eq.s32.totalorder %v79_v41, %v2447_v35  ;;  %vm177_vm10 = vcmp.eq.s32.totalorder %v79_v41, %v2450_v36 }
  0x7e   :  { %2118 = vmatmul.msk.f32.vlgmr.msra.gmra.mxu2 %vm169_vm2, %v2315_v39  ;;  %2150 = vmatmul.msk.f32.vlgmr.msra.gmra.mxu3 %vm170_vm3, %v2315_v39  ;;  %vm178_vm11 = vcmp.eq.s32.totalorder %v79_v41, %v2453_v37  ;;  %vm183_vm0 = vcmp.eq.s32.totalorder %v85_v43, %v2444_v34  ;;  %vm184_vm1 = vcmp.eq.s32.totalorder %v85_v43, %v2447_v35 }
  0x7f   :  { %vm185_vm2 = vcmp.eq.s32.totalorder %v85_v43, %v2450_v36  ;;  %vm186_vm3 = vcmp.eq.s32.totalorder %v85_v43, %v2453_v37 }
  0x82   :  { %v115_v53 = vpop.permute.xlu2 %114 }
  0x83   :  { %v76_v40 = vpop.permute.xlu0 %75  ;;  %v82_v42 = vpop.permute.xlu1 %81 }
  0x84   :  { %vm171_vm4 = vcmp.eq.s32.totalorder %v76_v40, %v2444_v34  ;;  %vm172_vm5 = vcmp.eq.s32.totalorder %v76_v40, %v2447_v35  ;;  %vm173_vm6 = vcmp.eq.s32.totalorder %v76_v40, %v2450_v36  ;;  %vm174_vm7 = vcmp.eq.s32.totalorder %v76_v40, %v2453_v37 }
  0x85   :  { %2055 = vmatmul.msk.f32.gmra.mxu0 %vm171_vm4, %v2315_v39  ;;  %2087 = vmatmul.msk.f32.gmra.mxu1 %vm172_vm5, %v2315_v39  ;;  %vm179_vm12 = vcmp.eq.s32.totalorder %v82_v42, %v2444_v34  ;;  %vm180_vm13 = vcmp.eq.s32.totalorder %v82_v42, %v2447_v35  ;;  %vm181_vm14 = vcmp.eq.s32.totalorder %v82_v42, %v2450_v36 }
  0x86   :  { %2119 = vmatmul.msk.f32.gmra.mxu2 %vm173_vm6, %v2315_v39  ;;  %2151 = vmatmul.msk.f32.gmra.mxu3 %vm174_vm7, %v2315_v39  ;;  %vm182_vm15 = vcmp.eq.s32.totalorder %v82_v42, %v2453_v37  ;;  %vm187_vm4 = vcmp.eq.s32.totalorder %v88_v44, %v2444_v34  ;;  %vm188_vm5 = vcmp.eq.s32.totalorder %v88_v44, %v2447_v35 }
  0x87   :  { %vm189_vm6 = vcmp.eq.s32.totalorder %v88_v44, %v2450_v36  ;;  %vm190_vm7 = vcmp.eq.s32.totalorder %v88_v44, %v2453_v37 }
  0x8a   :  { %v124_v0 = vpop.permute.xlu2 %123 }
  0x8b   :  { %v91_v45 = vpop.permute.xlu0 %90  ;;  %v94_v46 = vpop.permute.xlu1 %93 }
  0x8d   :  { %2056 = vmatmul.msk.f32.gmra.mxu0 %vm175_vm8, %v2315_v39  ;;  %2088 = vmatmul.msk.f32.gmra.mxu1 %vm176_vm9, %v2315_v39  ;;  %vm191_vm8 = vcmp.eq.s32.totalorder %v91_v45, %v2444_v34  ;;  %vm192_vm9 = vcmp.eq.s32.totalorder %v91_v45, %v2447_v35 }
  0x8e   :  { %2120 = vmatmul.msk.f32.gmra.mxu2 %vm177_vm10, %v2315_v39  ;;  %2152 = vmatmul.msk.f32.gmra.mxu3 %vm178_vm11, %v2315_v39  ;;  %vm193_vm10 = vcmp.eq.s32.totalorder %v91_v45, %v2450_v36  ;;  %vm194_vm11 = vcmp.eq.s32.totalorder %v91_v45, %v2453_v37 }
  0x92   :  { %v133_v27 = vpop.permute.xlu2 %132 }
  0x93   :  { %v100_v48 = vpop.permute.xlu0 %99  ;;  %v103_v49 = vpop.permute.xlu1 %102 }
  0x95   :  { %2057 = vmatmul.msk.f32.gmra.mxu0 %vm179_vm12, %v2315_v39  ;;  %2089 = vmatmul.msk.f32.gmra.mxu1 %vm180_vm13, %v2315_v39  ;;  %vm195_vm12 = vcmp.eq.s32.totalorder %v94_v46, %v2444_v34  ;;  %vm196_vm13 = vcmp.eq.s32.totalorder %v94_v46, %v2447_v35 }
  0x96   :  { %2121 = vmatmul.msk.f32.gmra.mxu2 %vm181_vm14, %v2315_v39  ;;  %2153 = vmatmul.msk.f32.gmra.mxu3 %vm182_vm15, %v2315_v39  ;;  %vm197_vm14 = vcmp.eq.s32.totalorder %v94_v46, %v2450_v36  ;;  %vm198_vm15 = vcmp.eq.s32.totalorder %v94_v46, %v2453_v37 }
  0x9b   :  { %v109_v51 = vpop.permute.xlu0 %108  ;;  %v112_v52 = vpop.permute.xlu1 %111 }
  0x9d   :  { %2058 = vmatmul.msk.f32.gmra.mxu0 %vm183_vm0, %v2315_v39  ;;  %2090 = vmatmul.msk.f32.gmra.mxu1 %vm184_vm1, %v2315_v39  ;;  %vm199_vm0 = vcmp.eq.s32.totalorder %v97_v47, %v2444_v34  ;;  %vm200_vm1 = vcmp.eq.s32.totalorder %v97_v47, %v2447_v35 }
  0x9e   :  { %2122 = vmatmul.msk.f32.gmra.mxu2 %vm185_vm2, %v2315_v39  ;;  %2154 = vmatmul.msk.f32.gmra.mxu3 %vm186_vm3, %v2315_v39  ;;  %vm201_vm2 = vcmp.eq.s32.totalorder %v97_v47, %v2450_v36  ;;  %vm202_vm3 = vcmp.eq.s32.totalorder %v97_v47, %v2453_v37 }
  0xa3   :  { %v118_v54 = vpop.permute.xlu0 %117  ;;  %v121_v55 = vpop.permute.xlu1 %120 }
  0xa5   :  { %2059 = vmatmul.msk.f32.gmra.mxu0 %vm187_vm4, %v2315_v39  ;;  %2091 = vmatmul.msk.f32.gmra.mxu1 %vm188_vm5, %v2315_v39  ;;  %vm203_vm4 = vcmp.eq.s32.totalorder %v100_v48, %v2444_v34  ;;  %vm204_vm5 = vcmp.eq.s32.totalorder %v100_v48, %v2447_v35 }
  0xa6   :  { %2123 = vmatmul.msk.f32.gmra.mxu2 %vm189_vm6, %v2315_v39  ;;  %2155 = vmatmul.msk.f32.gmra.mxu3 %vm190_vm7, %v2315_v39  ;;  %vm205_vm6 = vcmp.eq.s32.totalorder %v100_v48, %v2450_v36  ;;  %vm206_vm7 = vcmp.eq.s32.totalorder %v100_v48, %v2453_v37 }
  0xab   :  { %v127_v3 = vpop.permute.xlu0 %126  ;;  %v130_v12 = vpop.permute.xlu1 %129 }
  0xad   :  { %2060 = vmatmul.msk.f32.gmra.mxu0 %vm191_vm8, %v2315_v39  ;;  %2092 = vmatmul.msk.f32.gmra.mxu1 %vm192_vm9, %v2315_v39  ;;  %vm207_vm8 = vcmp.eq.s32.totalorder %v103_v49, %v2444_v34  ;;  %vm208_vm9 = vcmp.eq.s32.totalorder %v103_v49, %v2447_v35 }
  0xae   :  { %2124 = vmatmul.msk.f32.gmra.mxu2 %vm193_vm10, %v2315_v39  ;;  %2156 = vmatmul.msk.f32.gmra.mxu3 %vm194_vm11, %v2315_v39  ;;  %vm209_vm10 = vcmp.eq.s32.totalorder %v103_v49, %v2450_v36  ;;  %vm210_vm11 = vcmp.eq.s32.totalorder %v103_v49, %v2453_v37 }
  0xb3   :  { %v136_v30 = vpop.permute.xlu0 %135  ;;  %v139_v44 = vpop.permute.xlu1 %138 }
  0xb5   :  { %2061 = vmatmul.msk.f32.gmra.mxu0 %vm195_vm12, %v2315_v39  ;;  %2093 = vmatmul.msk.f32.gmra.mxu1 %vm196_vm13, %v2315_v39  ;;  %vm211_vm12 = vcmp.eq.s32.totalorder %v106_v50, %v2444_v34  ;;  %vm212_vm13 = vcmp.eq.s32.totalorder %v106_v50, %v2447_v35 }
  0xb6   :  { %2125 = vmatmul.msk.f32.gmra.mxu2 %vm197_vm14, %v2315_v39  ;;  %2157 = vmatmul.msk.f32.gmra.mxu3 %vm198_vm15, %v2315_v39  ;;  %vm213_vm14 = vcmp.eq.s32.totalorder %v106_v50, %v2450_v36  ;;  %vm214_vm15 = vcmp.eq.s32.totalorder %v106_v50, %v2453_v37 }
  0xbd   :  { %2062 = vmatmul.msk.f32.gmra.mxu0 %vm199_vm0, %v2315_v39  ;;  %2094 = vmatmul.msk.f32.gmra.mxu1 %vm200_vm1, %v2315_v39  ;;  %vm215_vm0 = vcmp.eq.s32.totalorder %v109_v51, %v2444_v34  ;;  %vm216_vm1 = vcmp.eq.s32.totalorder %v109_v51, %v2447_v35 }
  0xbe   :  { %2126 = vmatmul.msk.f32.gmra.mxu2 %vm201_vm2, %v2315_v39  ;;  %2158 = vmatmul.msk.f32.gmra.mxu3 %vm202_vm3, %v2315_v39  ;;  %vm217_vm2 = vcmp.eq.s32.totalorder %v109_v51, %v2450_v36  ;;  %vm218_vm3 = vcmp.eq.s32.totalorder %v109_v51, %v2453_v37 }
  0xc5   :  { %2063 = vmatmul.msk.f32.gmra.mxu0 %vm203_vm4, %v2315_v39  ;;  %2095 = vmatmul.msk.f32.gmra.mxu1 %vm204_vm5, %v2315_v39  ;;  %vm219_vm4 = vcmp.eq.s32.totalorder %v112_v52, %v2444_v34  ;;  %vm220_vm5 = vcmp.eq.s32.totalorder %v112_v52, %v2447_v35 }
  0xc6   :  { %2127 = vmatmul.msk.f32.gmra.mxu2 %vm205_vm6, %v2315_v39  ;;  %2159 = vmatmul.msk.f32.gmra.mxu3 %vm206_vm7, %v2315_v39  ;;  %vm221_vm6 = vcmp.eq.s32.totalorder %v112_v52, %v2450_v36  ;;  %vm222_vm7 = vcmp.eq.s32.totalorder %v112_v52, %v2453_v37 }
  0xcd   :  { %2064 = vmatmul.msk.f32.gmra.mxu0 %vm207_vm8, %v2315_v39  ;;  %2096 = vmatmul.msk.f32.gmra.mxu1 %vm208_vm9, %v2315_v39  ;;  %vm223_vm8 = vcmp.eq.s32.totalorder %v115_v53, %v2444_v34  ;;  %vm224_vm9 = vcmp.eq.s32.totalorder %v115_v53, %v2447_v35 }
  0xce   :  { %2128 = vmatmul.msk.f32.gmra.mxu2 %vm209_vm10, %v2315_v39  ;;  %2160 = vmatmul.msk.f32.gmra.mxu3 %vm210_vm11, %v2315_v39  ;;  %vm225_vm10 = vcmp.eq.s32.totalorder %v115_v53, %v2450_v36  ;;  %vm226_vm11 = vcmp.eq.s32.totalorder %v115_v53, %v2453_v37  ;;  %v142_v53 = vpop.permute.xlu2 %141 }
  0xd5   :  { %2065 = vmatmul.msk.f32.gmra.mxu0 %vm211_vm12, %v2315_v39  ;;  %2097 = vmatmul.msk.f32.gmra.mxu1 %vm212_vm13, %v2315_v39  ;;  %vm227_vm12 = vcmp.eq.s32.totalorder %v118_v54, %v2444_v34  ;;  %vm228_vm13 = vcmp.eq.s32.totalorder %v118_v54, %v2447_v35 }
  0xd6   :  { %2129 = vmatmul.msk.f32.gmra.mxu2 %vm213_vm14, %v2315_v39  ;;  %2161 = vmatmul.msk.f32.gmra.mxu3 %vm214_vm15, %v2315_v39  ;;  %vm229_vm14 = vcmp.eq.s32.totalorder %v118_v54, %v2450_v36  ;;  %vm230_vm15 = vcmp.eq.s32.totalorder %v118_v54, %v2453_v37 }
  0xdd   :  { %2066 = vmatmul.msk.f32.gmra.mxu0 %vm215_vm0, %v2315_v39  ;;  %2098 = vmatmul.msk.f32.gmra.mxu1 %vm216_vm1, %v2315_v39  ;;  %vm231_vm0 = vcmp.eq.s32.totalorder %v121_v55, %v2444_v34  ;;  %vm232_vm1 = vcmp.eq.s32.totalorder %v121_v55, %v2447_v35 }
  0xde   :  { %2130 = vmatmul.msk.f32.gmra.mxu2 %vm217_vm2, %v2315_v39  ;;  %2162 = vmatmul.msk.f32.gmra.mxu3 %vm218_vm3, %v2315_v39  ;;  %vm233_vm2 = vcmp.eq.s32.totalorder %v121_v55, %v2450_v36  ;;  %vm234_vm3 = vcmp.eq.s32.totalorder %v121_v55, %v2453_v37 }
  0xe5   :  { %2067 = vmatmul.msk.f32.gmra.mxu0 %vm219_vm4, %v2315_v39  ;;  %2099 = vmatmul.msk.f32.gmra.mxu1 %vm220_vm5, %v2315_v39  ;;  %vm235_vm4 = vcmp.eq.s32.totalorder %v124_v0, %v2444_v34  ;;  %vm236_vm5 = vcmp.eq.s32.totalorder %v124_v0, %v2447_v35 }
  0xe6   :  { %2131 = vmatmul.msk.f32.gmra.mxu2 %vm221_vm6, %v2315_v39  ;;  %2163 = vmatmul.msk.f32.gmra.mxu3 %vm222_vm7, %v2315_v39  ;;  %vm237_vm6 = vcmp.eq.s32.totalorder %v124_v0, %v2450_v36  ;;  %vm238_vm7 = vcmp.eq.s32.totalorder %v124_v0, %v2453_v37 }
  0xed   :  { %2068 = vmatmul.msk.f32.gmra.mxu0 %vm223_vm8, %v2315_v39  ;;  %2100 = vmatmul.msk.f32.gmra.mxu1 %vm224_vm9, %v2315_v39  ;;  %vm239_vm8 = vcmp.eq.s32.totalorder %v127_v3, %v2444_v34  ;;  %vm240_vm9 = vcmp.eq.s32.totalorder %v127_v3, %v2447_v35 }
  0xee   :  { %2132 = vmatmul.msk.f32.gmra.mxu2 %vm225_vm10, %v2315_v39  ;;  %2164 = vmatmul.msk.f32.gmra.mxu3 %vm226_vm11, %v2315_v39  ;;  %vm241_vm10 = vcmp.eq.s32.totalorder %v127_v3, %v2450_v36  ;;  %vm242_vm11 = vcmp.eq.s32.totalorder %v127_v3, %v2453_v37 }
  0xf5   :  { %2069 = vmatmul.msk.f32.gmra.mxu0 %vm227_vm12, %v2315_v39  ;;  %2101 = vmatmul.msk.f32.gmra.mxu1 %vm228_vm13, %v2315_v39  ;;  %vm243_vm12 = vcmp.eq.s32.totalorder %v130_v12, %v2444_v34  ;;  %vm244_vm13 = vcmp.eq.s32.totalorder %v130_v12, %v2447_v35 }
  0xf6   :  { %2133 = vmatmul.msk.f32.gmra.mxu2 %vm229_vm14, %v2315_v39  ;;  %2165 = vmatmul.msk.f32.gmra.mxu3 %vm230_vm15, %v2315_v39  ;;  %vm245_vm14 = vcmp.eq.s32.totalorder %v130_v12, %v2450_v36  ;;  %vm246_vm15 = vcmp.eq.s32.totalorder %v130_v12, %v2453_v37 }
  0xfa   :  { %v632_v56 = vpop.f32.mrf.mxu0  ;;  %v745_v57 = vpop.f32.mrf.mxu1 }
  0xfb   :  { %v746_v58 = vadd.f32 %v745_v57, %v632_v56 }
  0xfd   :  { %2070 = vmatmul.msk.f32.gmra.mxu0 %vm231_vm0, %v2315_v39  ;;  %2102 = vmatmul.msk.f32.gmra.mxu1 %vm232_vm1, %v2315_v39  ;;  %vm247_vm0 = vcmp.eq.s32.totalorder %v133_v27, %v2444_v34  ;;  %vm248_vm1 = vcmp.eq.s32.totalorder %v133_v27, %v2447_v35 }
  0xfe   :  { %2134 = vmatmul.msk.f32.gmra.mxu2 %vm233_vm2, %v2315_v39  ;;  %2166 = vmatmul.msk.f32.gmra.mxu3 %vm234_vm3, %v2315_v39  ;;  %vm249_vm2 = vcmp.eq.s32.totalorder %v133_v27, %v2450_v36  ;;  %vm250_vm3 = vcmp.eq.s32.totalorder %v133_v27, %v2453_v37 }
 0x101   :  { %v858_v59 = vpop.f32.mrf.mxu2  ;;  %v971_v60 = vpop.f32.mrf.mxu3 }
 0x102   :  { %v859_v61 = vadd.f32 %v858_v59, %v746_v58  ;;  %v635_v62 = vpop.f32.mrf.mxu0  ;;  %v748_v63 = vpop.f32.mrf.mxu1 }
 0x103   :  { %v749_v4 = vadd.f32 %v748_v63, %v635_v62  ;;  %v145_v62 = vpop.permute.xlu0 %144 }
 0x104   :  { %v2591_v1 = vadd.f32 %v971_v60, %v859_v61 }
 0x105   :  { %2071 = vmatmul.msk.f32.gmra.mxu0 %vm235_vm4, %v2315_v39  ;;  %2103 = vmatmul.msk.f32.gmra.mxu1 %vm236_vm5, %v2315_v39  ;;  %vm251_vm4 = vcmp.eq.s32.totalorder %v136_v30, %v2444_v34  ;;  %vm252_vm5 = vcmp.eq.s32.totalorder %v136_v30, %v2447_v35 }
 0x106   :  { %1067 = vadd.xlane.f32.xlu2 %v2591_v1  ;;  %2135 = vmatmul.msk.f32.gmra.mxu2 %vm237_vm6, %v2315_v39  ;;  %v1131_v2 = vmul.f32 %v2591_v1, %v2591_v1  ;;  %vm253_vm6 = vcmp.eq.s32.totalorder %v136_v30, %v2450_v36 }
 0x107   :  { %2167 = vmatmul.msk.f32.gmra.mxu3 %vm238_vm7, %v2315_v39  ;;  %vm254_vm7 = vcmp.eq.s32.totalorder %v136_v30, %v2453_v37 }
 0x108   :  { %1163 = vadd.xlane.f32.xlu0 %v1131_v2 }
 0x109   :  { %v861_v5 = vpop.f32.mrf.mxu2  ;;  %v974_v6 = vpop.f32.mrf.mxu3 }
 0x10a   :  { %v862_v7 = vadd.f32 %v861_v5, %v749_v4  ;;  %v638_v8 = vpop.f32.mrf.mxu0  ;;  %v751_v9 = vpop.f32.mrf.mxu1 }
 0x10b   :  { %v752_v13 = vadd.f32 %v751_v9, %v638_v8  ;;  %v148_v8 = vpop.permute.xlu1 %147 }
 0x10c   :  { %v2604_v10 = vadd.f32 %v974_v6, %v862_v7 }
 0x10d   :  { %2072 = vmatmul.msk.f32.gmra.mxu0 %vm239_vm8, %v2315_v39  ;;  %2104 = vmatmul.msk.f32.gmra.mxu1 %vm240_vm9, %v2315_v39  ;;  %vm255_vm8 = vcmp.eq.s32.totalorder %v139_v44, %v2444_v34  ;;  %vm256_vm9 = vcmp.eq.s32.totalorder %v139_v44, %v2447_v35 }
 0x10e   :  { %2136 = vmatmul.msk.f32.gmra.mxu2 %vm241_vm10, %v2315_v39  ;;  %v1132_v11 = vmul.f32 %v2604_v10, %v2604_v10  ;;  %vm257_vm10 = vcmp.eq.s32.totalorder %v139_v44, %v2450_v36 }
 0x10f   :  { %2168 = vmatmul.msk.f32.gmra.mxu3 %vm242_vm11, %v2315_v39  ;;  %vm258_vm11 = vcmp.eq.s32.totalorder %v139_v44, %v2453_v37 }
 0x110   :  { %1069 = vadd.xlane.f32.xlu0 %v2604_v10  ;;  %1165 = vadd.xlane.f32.xlu1 %v1132_v11 }
 0x111   :  { %v864_v14 = vpop.f32.mrf.mxu2  ;;  %v977_v15 = vpop.f32.mrf.mxu3 }
 0x112   :  { %v865_v16 = vadd.f32 %v864_v14, %v752_v13  ;;  %v641_v17 = vpop.f32.mrf.mxu0  ;;  %v754_v18 = vpop.f32.mrf.mxu1 }
 0x113   :  { %v755_v21 = vadd.f32 %v754_v18, %v641_v17  ;;  %v151_v18 = vpop.permute.xlu2 %150  ;;  %v157_v44 = vpop.permute.xlu1 %156 }
 0x114   :  { %v2617_v19 = vadd.f32 %v977_v15, %v865_v16 }
 0x115   :  { %2073 = vmatmul.msk.f32.gmra.mxu0 %vm243_vm12, %v2315_v39  ;;  %2105 = vmatmul.msk.f32.gmra.mxu1 %vm244_vm13, %v2315_v39  ;;  %vm259_vm12 = vcmp.eq.s32.totalorder %v142_v53, %v2444_v34  ;;  %vm260_vm13 = vcmp.eq.s32.totalorder %v142_v53, %v2447_v35 }
 0x116   :  { %2137 = vmatmul.msk.f32.gmra.mxu2 %vm245_vm14, %v2315_v39  ;;  %v1133_v20 = vmul.f32 %v2617_v19, %v2617_v19  ;;  %vm261_vm14 = vcmp.eq.s32.totalorder %v142_v53, %v2450_v36 }
 0x117   :  { %2169 = vmatmul.msk.f32.gmra.mxu3 %vm246_vm15, %v2315_v39  ;;  %vm262_vm15 = vcmp.eq.s32.totalorder %v142_v53, %v2453_v37 }
 0x118   :  { %1071 = vadd.xlane.f32.xlu1 %v2617_v19  ;;  %1167 = vadd.xlane.f32.xlu2 %v1133_v20 }
 0x119   :  { %v867_v22 = vpop.f32.mrf.mxu2  ;;  %v980_v23 = vpop.f32.mrf.mxu3 }
 0x11a   :  { %v868_v24 = vadd.f32 %v867_v22, %v755_v21  ;;  %v644_v25 = vpop.f32.mrf.mxu0  ;;  %v757_v26 = vpop.f32.mrf.mxu1 }
 0x11b   :  { %v758_v31 = vadd.f32 %v757_v26, %v644_v25 }
 0x11c   :  { %v2630_v28 = vadd.f32 %v980_v23, %v868_v24 }
 0x11d   :  { %2074 = vmatmul.msk.f32.gmra.mxu0 %vm247_vm0, %v2315_v39  ;;  %2106 = vmatmul.msk.f32.gmra.mxu1 %vm248_vm1, %v2315_v39  ;;  %vm263_vm0 = vcmp.eq.s32.totalorder %v145_v62, %v2444_v34  ;;  %vm264_vm1 = vcmp.eq.s32.totalorder %v145_v62, %v2447_v35 }
 0x11e   :  { %2138 = vmatmul.msk.f32.gmra.mxu2 %vm249_vm2, %v2315_v39  ;;  %v1134_v29 = vmul.f32 %v2630_v28, %v2630_v28  ;;  %vm265_vm2 = vcmp.eq.s32.totalorder %v145_v62, %v2450_v36 }
 0x11f   :  { %2170 = vmatmul.msk.f32.gmra.mxu3 %vm250_vm3, %v2315_v39  ;;  %vm266_vm3 = vcmp.eq.s32.totalorder %v145_v62, %v2453_v37 }
 0x120   :  { %1073 = vadd.xlane.f32.xlu2 %v2630_v28  ;;  %1169 = vadd.xlane.f32.xlu0 %v1134_v29  ;;  %v154_v29 = vpop.permute.xlu0 %153 }
 0x121   :  { %v870_v32 = vpop.f32.mrf.mxu2  ;;  %v983_v33 = vpop.f32.mrf.mxu3 }
 0x122   :  { %v871_v38 = vadd.f32 %v870_v32, %v758_v31  ;;  %v647_v40 = vpop.f32.mrf.mxu0  ;;  %v760_v41 = vpop.f32.mrf.mxu1 }
 0x123   :  { %v761_v45 = vadd.f32 %v760_v41, %v647_v40 }
 0x124   :  { %v2643_v42 = vadd.f32 %v983_v33, %v871_v38 }
 0x125   :  { %2075 = vmatmul.msk.f32.gmra.mxu0 %vm251_vm4, %v2315_v39  ;;  %2107 = vmatmul.msk.f32.gmra.mxu1 %vm252_vm5, %v2315_v39  ;;  %vm267_vm4 = vcmp.eq.s32.totalorder %v148_v8, %v2444_v34  ;;  %vm268_vm5 = vcmp.eq.s32.totalorder %v148_v8, %v2447_v35 }
 0x126   :  { %2139 = vmatmul.msk.f32.gmra.mxu2 %vm253_vm6, %v2315_v39  ;;  %v1135_v43 = vmul.f32 %v2643_v42, %v2643_v42  ;;  %vm269_vm6 = vcmp.eq.s32.totalorder %v148_v8, %v2450_v36 }
 0x127   :  { %2171 = vmatmul.msk.f32.gmra.mxu3 %vm254_vm7, %v2315_v39  ;;  %vm270_vm7 = vcmp.eq.s32.totalorder %v148_v8, %v2453_v37 }
 0x128   :  { %1075 = vadd.xlane.f32.xlu2 %v2643_v42  ;;  %1171 = vadd.xlane.f32.xlu1 %v1135_v43 }
 0x129   :  { %v873_v46 = vpop.f32.mrf.mxu2  ;;  %v986_v47 = vpop.f32.mrf.mxu3 }
 0x12a   :  { %v874_v48 = vadd.f32 %v873_v46, %v761_v45  ;;  %v650_v49 = vpop.f32.mrf.mxu0  ;;  %v763_v50 = vpop.f32.mrf.mxu1 }
 0x12b   :  { %v764_v54 = vadd.f32 %v763_v50, %v650_v49 }
 0x12c   :  { %v2656_v51 = vadd.f32 %v986_v47, %v874_v48 }
 0x12d   :  { %2076 = vmatmul.msk.f32.gmra.mxu0 %vm255_vm8, %v2315_v39  ;;  %2108 = vmatmul.msk.f32.gmra.mxu1 %vm256_vm9, %v2315_v39  ;;  %vm271_vm8 = vcmp.eq.s32.totalorder %v151_v18, %v2444_v34  ;;  %vm272_vm9 = vcmp.eq.s32.totalorder %v151_v18, %v2447_v35 }
 0x12e   :  { %1077 = vadd.xlane.f32.xlu0 %v2656_v51  ;;  %2140 = vmatmul.msk.f32.gmra.mxu2 %vm257_vm10, %v2315_v39  ;;  %v1136_v52 = vmul.f32 %v2656_v51, %v2656_v51  ;;  %vm273_vm10 = vcmp.eq.s32.totalorder %v151_v18, %v2450_v36 }
 0x12f   :  { %2172 = vmatmul.msk.f32.gmra.mxu3 %vm258_vm11, %v2315_v39  ;;  %vm274_vm11 = vcmp.eq.s32.totalorder %v151_v18, %v2453_v37 }
 0x130   :  { %1173 = vadd.xlane.f32.xlu2 %v1136_v52 }
 0x131   :  { %v876_v55 = vpop.f32.mrf.mxu2  ;;  %v989_v56 = vpop.f32.mrf.mxu3 }
 0x132   :  { %v877_v57 = vadd.f32 %v876_v55, %v764_v54  ;;  %v653_v58 = vpop.f32.mrf.mxu0  ;;  %v766_v59 = vpop.f32.mrf.mxu1 }
 0x133   :  { %v767_v63 = vadd.f32 %v766_v59, %v653_v58  ;;  %v160_v54 = vpop.permute.xlu2 %159 }
 0x134   :  { %v2669_v60 = vadd.f32 %v989_v56, %v877_v57 }
 0x135   :  { %2077 = vmatmul.msk.f32.gmra.mxu0 %vm259_vm12, %v2315_v39  ;;  %2109 = vmatmul.msk.f32.gmra.mxu1 %vm260_vm13, %v2315_v39  ;;  %vm275_vm12 = vcmp.eq.s32.totalorder %v154_v29, %v2444_v34  ;;  %vm276_vm13 = vcmp.eq.s32.totalorder %v154_v29, %v2447_v35 }
 0x136   :  { %1079 = vadd.xlane.f32.xlu1 %v2669_v60  ;;  %2141 = vmatmul.msk.f32.gmra.mxu2 %vm261_vm14, %v2315_v39  ;;  %v1137_v61 = vmul.f32 %v2669_v60, %v2669_v60  ;;  %vm277_vm14 = vcmp.eq.s32.totalorder %v154_v29, %v2450_v36 }
 0x137   :  { %2173 = vmatmul.msk.f32.gmra.mxu3 %vm262_vm15, %v2315_v39  ;;  %vm278_vm15 = vcmp.eq.s32.totalorder %v154_v29, %v2453_v37 }
 0x138   :  { %1175 = vadd.xlane.f32.xlu0 %v1137_v61 }
 0x139   :  { %v879_v0 = vpop.f32.mrf.mxu2  ;;  %v992_v2 = vpop.f32.mrf.mxu3 }
 0x13a   :  { %v880_v3 = vadd.f32 %v879_v0, %v767_v63  ;;  %v656_v4 = vpop.f32.mrf.mxu0  ;;  %v769_v5 = vpop.f32.mrf.mxu1 }
 0x13b   :  { %v770_v9 = vadd.f32 %v769_v5, %v656_v4  ;;  %v163_v0 = vpop.permute.xlu0 %162 }
 0x13c   :  { %v2682_v6 = vadd.f32 %v992_v2, %v880_v3 }
 0x13d   :  { %2078 = vmatmul.msk.f32.gmra.mxu0 %vm263_vm0, %v2315_v39  ;;  %2110 = vmatmul.msk.f32.gmra.mxu1 %vm264_vm1, %v2315_v39  ;;  %vm279_vm0 = vcmp.eq.s32.totalorder %v157_v44, %v2444_v34  ;;  %vm280_vm1 = vcmp.eq.s32.totalorder %v157_v44, %v2447_v35 }
 0x13e   :  { %1081 = vadd.xlane.f32.xlu2 %v2682_v6  ;;  %2142 = vmatmul.msk.f32.gmra.mxu2 %vm265_vm2, %v2315_v39  ;;  %v1138_v7 = vmul.f32 %v2682_v6, %v2682_v6  ;;  %vm281_vm2 = vcmp.eq.s32.totalorder %v157_v44, %v2450_v36 }
 0x13f   :  { %2174 = vmatmul.msk.f32.gmra.mxu3 %vm266_vm3, %v2315_v39  ;;  %vm282_vm3 = vcmp.eq.s32.totalorder %v157_v44, %v2453_v37 }
 0x140   :  { %1177 = vadd.xlane.f32.xlu1 %v1138_v7 }
 0x141   :  { %v882_v11 = vpop.f32.mrf.mxu2  ;;  %v995_v12 = vpop.f32.mrf.mxu3 }
 0x142   :  { %v883_v13 = vadd.f32 %v882_v11, %v770_v9  ;;  %v659_v14 = vpop.f32.mrf.mxu0  ;;  %v772_v15 = vpop.f32.mrf.mxu1 }
 0x143   :  { %v773_v20 = vadd.f32 %v772_v15, %v659_v14 }
 0x144   :  { %v2695_v16 = vadd.f32 %v995_v12, %v883_v13  ;;  %v166_v12 = vpop.permute.xlu1 %165 }
 0x145   :  { %2079 = vmatmul.msk.f32.gmra.mxu0 %vm267_vm4, %v2315_v39  ;;  %2111 = vmatmul.msk.f32.gmra.mxu1 %vm268_vm5, %v2315_v39  ;;  %vm283_vm4 = vcmp.eq.s32.totalorder %v160_v54, %v2444_v34  ;;  %vm284_vm5 = vcmp.eq.s32.totalorder %v160_v54, %v2447_v35 }
 0x146   :  { %1083 = vadd.xlane.f32.xlu0 %v2695_v16  ;;  %2143 = vmatmul.msk.f32.gmra.mxu2 %vm269_vm6, %v2315_v39  ;;  %v1139_v17 = vmul.f32 %v2695_v16, %v2695_v16  ;;  %vm285_vm6 = vcmp.eq.s32.totalorder %v160_v54, %v2450_v36 }
 0x147   :  { %2175 = vmatmul.msk.f32.gmra.mxu3 %vm270_vm7, %v2315_v39  ;;  %vm286_vm7 = vcmp.eq.s32.totalorder %v160_v54, %v2453_v37 }
 0x148   :  { %1179 = vadd.xlane.f32.xlu2 %v1139_v17 }
 0x149   :  { %v885_v21 = vpop.f32.mrf.mxu2  ;;  %v998_v22 = vpop.f32.mrf.mxu3 }
 0x14a   :  { %v886_v23 = vadd.f32 %v885_v21, %v773_v20  ;;  %v662_v24 = vpop.f32.mrf.mxu0  ;;  %v775_v25 = vpop.f32.mrf.mxu1 }
 0x14b   :  { %v776_v30 = vadd.f32 %v775_v25, %v662_v24 }
 0x14c   :  { %v2708_v26 = vadd.f32 %v998_v22, %v886_v23 }
 0x14d   :  { %2080 = vmatmul.msk.f32.gmra.mxu0 %vm271_vm8, %v2315_v39  ;;  %2112 = vmatmul.msk.f32.gmra.mxu1 %vm272_vm9, %v2315_v39  ;;  %vm287_vm8 = vcmp.eq.s32.totalorder %v163_v0, %v2444_v34  ;;  %vm288_vm9 = vcmp.eq.s32.totalorder %v163_v0, %v2447_v35 }
 0x14e   :  { %1085 = vadd.xlane.f32.xlu1 %v2708_v26  ;;  %2144 = vmatmul.msk.f32.gmra.mxu2 %vm273_vm10, %v2315_v39  ;;  %v1140_v27 = vmul.f32 %v2708_v26, %v2708_v26  ;;  %vm289_vm10 = vcmp.eq.s32.totalorder %v163_v0, %v2450_v36 }
 0x14f   :  { %2176 = vmatmul.msk.f32.gmra.mxu3 %vm274_vm11, %v2315_v39  ;;  %vm290_vm11 = vcmp.eq.s32.totalorder %v163_v0, %v2453_v37 }
 0x150   :  { %1181 = vadd.xlane.f32.xlu0 %v1140_v27 }
 0x151   :  { %v888_v31 = vpop.f32.mrf.mxu2  ;;  %v1001_v32 = vpop.f32.mrf.mxu3 }
 0x152   :  { %v889_v33 = vadd.f32 %v888_v31, %v776_v30  ;;  %v665_v38 = vpop.f32.mrf.mxu0  ;;  %v778_v40 = vpop.f32.mrf.mxu1 }
 0x153   :  { %v779_v45 = vadd.f32 %v778_v40, %v665_v38 }
 0x154   :  { %v2721_v41 = vadd.f32 %v1001_v32, %v889_v33 }
 0x155   :  { %2081 = vmatmul.msk.f32.gmra.mxu0 %vm275_vm12, %v2315_v39  ;;  %2113 = vmatmul.msk.f32.gmra.mxu1 %vm276_vm13, %v2315_v39  ;;  %vm291_vm12 = vcmp.eq.s32.totalorder %v166_v12, %v2444_v34  ;;  %vm292_vm13 = vcmp.eq.s32.totalorder %v166_v12, %v2447_v35 }
 0x156   :  { %1087 = vadd.xlane.f32.xlu2 %v2721_v41  ;;  %2145 = vmatmul.msk.f32.gmra.mxu2 %vm277_vm14, %v2315_v39  ;;  %v1141_v43 = vmul.f32 %v2721_v41, %v2721_v41  ;;  %vm293_vm14 = vcmp.eq.s32.totalorder %v166_v12, %v2450_v36 }
 0x157   :  { %2177 = vmatmul.msk.f32.gmra.mxu3 %vm278_vm15, %v2315_v39  ;;  %vm294_vm15 = vcmp.eq.s32.totalorder %v166_v12, %v2453_v37 }
 0x158   :  { %1183 = vadd.xlane.f32.xlu1 %v1141_v43 }
 0x159   :  { %v891_v46 = vpop.f32.mrf.mxu2  ;;  %v1004_v47 = vpop.f32.mrf.mxu3 }
 0x15a   :  { %v892_v48 = vadd.f32 %v891_v46, %v779_v45  ;;  %v668_v49 = vpop.f32.mrf.mxu0  ;;  %v781_v50 = vpop.f32.mrf.mxu1 }
 0x15b   :  { %v782_v55 = vadd.f32 %v781_v50, %v668_v49 }
 0x15c   :  { %v2734_v52 = vadd.f32 %v1004_v47, %v892_v48 }
 0x15d   :  { %2082 = vmatmul.msk.f32.gmra.mxu0 %vm279_vm0, %v2315_v39  ;;  %2114 = vmatmul.msk.f32.gmra.mxu1 %vm280_vm1, %v2315_v39 }
 0x15e   :  { %1089 = vadd.xlane.f32.xlu0 %v2734_v52  ;;  %2146 = vmatmul.msk.f32.gmra.mxu2 %vm281_vm2, %v2315_v39  ;;  %v1142_v53 = vmul.f32 %v2734_v52, %v2734_v52 }
 0x15f   :  { %2178 = vmatmul.msk.f32.gmra.mxu3 %vm282_vm3, %v2315_v39 }
 0x160   :  { %1185 = vadd.xlane.f32.xlu2 %v1142_v53 }
 0x161   :  { %v894_v56 = vpop.f32.mrf.mxu2  ;;  %v1007_v57 = vpop.f32.mrf.mxu3 }
 0x162   :  { %v895_v58 = vadd.f32 %v894_v56, %v782_v55  ;;  %v671_v59 = vpop.f32.mrf.mxu0  ;;  %v784_v61 = vpop.f32.mrf.mxu1 }
 0x163   :  { %v785_v2 = vadd.f32 %v784_v61, %v671_v59 }
 0x164   :  { %v2747_v62 = vadd.f32 %v1007_v57, %v895_v58 }
 0x165   :  { %2083 = vmatmul.msk.f32.gmra.mxu0 %vm283_vm4, %v2315_v39  ;;  %2115 = vmatmul.msk.f32.gmra.mxu1 %vm284_vm5, %v2315_v39 }
 0x166   :  { %1091 = vadd.xlane.f32.xlu1 %v2747_v62  ;;  %2147 = vmatmul.msk.f32.gmra.mxu2 %vm285_vm6, %v2315_v39  ;;  %v1143_v63 = vmul.f32 %v2747_v62, %v2747_v62 }
 0x167   :  { %2179 = vmatmul.msk.f32.gmra.mxu3 %vm286_vm7, %v2315_v39 }
 0x168   :  { %1187 = vadd.xlane.f32.xlu0 %v1143_v63 }
 0x169   :  { %v897_v3 = vpop.f32.mrf.mxu2  ;;  %v1010_v4 = vpop.f32.mrf.mxu3 }
 0x16a   :  { %v898_v5 = vadd.f32 %v897_v3, %v785_v2  ;;  %v674_v7 = vpop.f32.mrf.mxu0  ;;  %v787_v8 = vpop.f32.mrf.mxu1 }
 0x16b   :  { %v788_v13 = vadd.f32 %v787_v8, %v674_v7 }
 0x16c   :  { %v2760_v9 = vadd.f32 %v1010_v4, %v898_v5 }
 0x16d   :  { %2084 = vmatmul.msk.f32.gmra.mxu0 %vm287_vm8, %v2315_v39  ;;  %2116 = vmatmul.msk.f32.gmra.mxu1 %vm288_vm9, %v2315_v39 }
 0x16e   :  { %1093 = vadd.xlane.f32.xlu2 %v2760_v9  ;;  %2148 = vmatmul.msk.f32.gmra.mxu2 %vm289_vm10, %v2315_v39  ;;  %v1144_v11 = vmul.f32 %v2760_v9, %v2760_v9 }
 0x16f   :  { %2180 = vmatmul.msk.f32.gmra.mxu3 %vm290_vm11, %v2315_v39 }
 0x170   :  { %1189 = vadd.xlane.f32.xlu1 %v1144_v11 }
 0x171   :  { %v900_v14 = vpop.f32.mrf.mxu2  ;;  %v1013_v15 = vpop.f32.mrf.mxu3 }
 0x172   :  { %v901_v17 = vadd.f32 %v900_v14, %v788_v13  ;;  %v677_v18 = vpop.f32.mrf.mxu0  ;;  %v790_v20 = vpop.f32.mrf.mxu1 }
 0x173   :  { %v791_v34 = vadd.f32 %v790_v20, %v677_v18 }
 0x174   :  { %v2773_v21 = vadd.f32 %v1013_v15, %v901_v17 }
 0x175   :  { %2085 = vmatmul.msk.f32.gmra.mxu0 %vm291_vm12, %v2315_v39  ;;  %2117 = vmatmul.msk.f32.gmra.mxu1 %vm292_vm13, %v2315_v39 }
 0x176   :  { %1095 = vadd.xlane.f32.xlu0 %v2773_v21  ;;  %2149 = vmatmul.msk.f32.gmra.mxu2 %vm293_vm14, %v2315_v39  ;;  %v1145_v22 = vmul.f32 %v2773_v21, %v2773_v21 }
 0x177   :  { %2181 = vmatmul.msk.f32.gmra.mxu3 %vm294_vm15, %v2315_v39 }
 0x178   :  { %1191 = vadd.xlane.f32.xlu2 %v1145_v22 }
 0x179   :  { %v1068_v35 = vpop.xlane.xlu2 %1067  ;;  %v903_v23 = vpop.f32.mrf.mxu2 }
 0x17a   :  { %v2786_v24 = vmul.f32 0.0078125, %v1068_v35  ;;  %v904_v25 = vadd.f32 %v903_v23, %v791_v34  ;;  %v1016_v27 = vpop.f32.mrf.mxu3  ;;  %v680_v36 = vpop.f32.mrf.mxu0 }
 0x17b   :  { %v793_v29 = vpop.f32.mrf.mxu1  ;;  %v1164_v30 = vpop.xlane.xlu0 %1163 }
 0x17c   :  { %v1291_v31 = vmul.f32 %v2786_v24, %v2786_v24  ;;  %v2790_v37 = vadd.f32 %v1016_v27, %v904_v25  ;;  %v1259_v32 = vmul.f32 0.0078125, %v1164_v30  ;;  %v794_v38 = vadd.f32 %v793_v29, %v680_v36 }
 0x17e   :  { %1097 = vadd.xlane.f32.xlu1 %v2790_v37  ;;  %v1146_v39 = vmul.f32 %v2790_v37, %v2790_v37  ;;  %v1323_v33 = vsub.f32 %v1259_v32, %v1291_v31 }
 0x180   :  { %1193 = vadd.xlane.f32.xlu0 %v1146_v39  ;;  %v1355_v40 = vmax.f32 %v1323_v33, 0.0 }
 0x181   :  { %v906_v43 = vpop.f32.mrf.mxu2 }
 0x182   :  { %v907_v44 = vadd.f32 %v906_v43, %v794_v38  ;;  %v1019_v45 = vpop.f32.mrf.mxu3  ;;  %v683_v46 = vpop.f32.mrf.mxu0  ;;  %v1419_v47 = vadd.f32 1e-05, %v1355_v40 }
 0x183   :  { %v1166_v48 = vpop.xlane.xlu1 %1165  ;;  %v796_v49 = vpop.f32.mrf.mxu1 }
 0x184   :  { %v2795_v50 = vadd.f32 %v1019_v45, %v907_v44  ;;  %v1070_v53 = vpop.xlane.xlu0 %1069  ;;  %2193 = vrsqrt.f32 %v1419_v47  ;;  %v1260_v56 = vmul.f32 0.0078125, %v1166_v48  ;;  %v797_v58 = vadd.f32 %v796_v49, %v683_v46  ;;  %v2827_v46 = vld [vmem:[%s3222_s2] ss:$0 sm:$0xff] }
 0x185   :  { %v2797_v54 = vmul.f32 0.0078125, %v1070_v53  ;;  %vm1457_vm1 = vweird.f32 %v1419_v47  ;;  %v1387_v45 = vsub.f32 %v2591_v1, %v2786_v24  ;;  %v2836_v49 = vld [vmem:[%s3223_s3] ss:$0 sm:$0xff] }
 0x186   :  { %1099 = vadd.xlane.f32.xlu2 %v2795_v50  ;;  %v1147_v55 = vmul.f32 %v2795_v50, %v2795_v50 }
 0x187   :  { %v1292_v57 = vmul.f32 %v2797_v54, %v2797_v54 }
 0x188   :  { %1195 = vadd.xlane.f32.xlu1 %v1147_v55 }
 0x189   :  { %v1324_v59 = vsub.f32 %v1260_v56, %v1292_v57  ;;  %v909_v61 = vpop.f32.mrf.mxu2 }
 0x18a   :  { %v910_v63 = vadd.f32 %v909_v61, %v797_v58  ;;  %v1022_v0 = vpop.f32.mrf.mxu3  ;;  %v686_v2 = vpop.f32.mrf.mxu0 }
 0x18b   :  { %v2194_v3 = vpop.eup %2193  ;;  %v1356_v4 = vmax.f32 %v1324_v59, 0.0  ;;  %v1072_v5 = vpop.xlane.xlu1 %1071 }
 0x18c   :  { %v1168_v7 = vpop.xlane.xlu2 %1167  ;;  %v1452_v8 = vmul.f32 %v2194_v3, %v1419_v47  ;;  %v2804_v11 = vadd.f32 %v1022_v0, %v910_v63  ;;  %v2806_v12 = vmul.f32 0.0078125, %v1072_v5  ;;  %v799_v13 = vpop.f32.mrf.mxu1  ;;  %vm1458_vm0 = vweird.f32 %v2194_v3 }
 0x18d   :  { %v2808_v14 = vadd.f32 1e-05, %v1356_v4  ;;  %v1261_v18 = vmul.f32 0.0078125, %v1168_v7  ;;  %v800_v35 = vadd.f32 %v799_v13, %v686_v2  ;;  %vm1459_vm2 = vmor %vm1457_vm1, %vm1458_vm0 }
 0x18e   :  { %v1453_v15 = vmul.f32 %v2194_v3, %v1452_v8  ;;  %v1293_v17 = vmul.f32 %v2806_v12, %v2806_v12  ;;  %1101 = vadd.xlane.f32.xlu0 %v2804_v11  ;;  %v1148_v20 = vmul.f32 %v2804_v11, %v2804_v11 }
 0x18f   :  { %2195 = vrsqrt.f32 %v2808_v14  ;;  %vm1467_vm4 = vweird.f32 %v2808_v14 }
 0x190   :  { %v1454_v22 = vmul.f32 0.5, %v1453_v15  ;;  %v1325_v34 = vsub.f32 %v1261_v18, %v1293_v17  ;;  %1197 = vadd.xlane.f32.xlu2 %v1148_v20 }
 0x191   :  { %v912_v23 = vpop.f32.mrf.mxu2 }
 0x192   :  { %v1455_v25 = vsub.f32 1.5, %v1454_v22  ;;  %v1357_v27 = vmax.f32 %v1325_v34, 0.0  ;;  %v913_v36 = vadd.f32 %v912_v23, %v800_v35  ;;  %v1025_v29 = vpop.f32.mrf.mxu3  ;;  %v689_v30 = vpop.f32.mrf.mxu0 }
 0x193   :  { %v1170_v43 = vpop.xlane.xlu0 %1169 }
 0x194   :  { %v1074_v31 = vpop.xlane.xlu2 %1073  ;;  %v1456_v32 = vmul.f32 %v2194_v3, %v1455_v25  ;;  %v2816_v39 = vadd.f32 1e-05, %v1357_v27  ;;  %v2818_v33 = vadd.f32 %v1025_v29, %v913_v36  ;;  %v802_v40 = vpop.f32.mrf.mxu1  ;;  %v1262_v53 = vmul.f32 0.0078125, %v1170_v43 }
 0x195   :  { %v2820_v38 = vmul.f32 0.0078125, %v1074_v31  ;;  %v2196_v44 = vpop.eup %2195  ;;  %v803_v56 = vadd.f32 %v802_v40, %v689_v30  ;;  %v1388_v36 = vsub.f32 %v2604_v10, %v2797_v54 }
 0x196   :  { %v1460_v47 = vsel %vm1459_vm2, %v2194_v3, %v1456_v32  ;;  %v1462_v48 = vmul.f32 %v2196_v44, %v2808_v14  ;;  %2197 = vrsqrt.f32 %v2816_v39  ;;  %1103 = vadd.xlane.f32.xlu1 %v2818_v33  ;;  %v1149_v57 = vmul.f32 %v2818_v33, %v2818_v33 }
 0x197   :  { %v1771_v1 = vmul.f32 %v1460_v47, %v1387_v45  ;;  %v1294_v24 = vmul.f32 %v2820_v38, %v2820_v38  ;;  %vm1468_vm3 = vweird.f32 %v2196_v44  ;;  %vm1477_vm7 = vweird.f32 %v2816_v39 }
 0x198   :  { %v1463_v55 = vmul.f32 %v2196_v44, %v1462_v48  ;;  %1199 = vadd.xlane.f32.xlu0 %v1149_v57  ;;  %vm1469_vm5 = vmor %vm1467_vm4, %vm1468_vm3 }
 0x199   :  { %v1807_v58 = vmul.f32 %v2827_v46, %v1771_v1  ;;  %v1326_v59 = vsub.f32 %v1262_v53, %v1294_v24  ;;  %v915_v61 = vpop.f32.mrf.mxu2 }
 0x19a   :  { %v1464_v63 = vmul.f32 0.5, %v1463_v55  ;;  %v916_v0 = vadd.f32 %v915_v61, %v803_v56  ;;  %v1028_v2 = vpop.f32.mrf.mxu3  ;;  %v692_v3 = vpop.f32.mrf.mxu0 }
 0x19b   :  { %v1843_v4 = vadd.f32 %v2836_v49, %v1807_v58  ;;  %v1358_v5 = vmax.f32 %v1326_v59, 0.0  ;;  %v1172_v8 = vpop.xlane.xlu1 %1171 }
 0x19c   :  { %v1076_v7 = vpop.xlane.xlu2 %1075  ;;  %v2198_v13 = vpop.eup %2197  ;;  %v1465_v15 = vsub.f32 1.5, %v1464_v63  ;;  %v2844_v17 = vadd.f32 %v1028_v2, %v916_v0  ;;  %v1263_v25 = vmul.f32 0.0078125, %v1172_v8  ;;  %v1389_v2 = vsub.f32 %v2617_v19, %v2806_v12 }
 0x19d   :  { %v2846_v18 = vmul.f32 0.0078125, %v1076_v7  ;;  %v805_v20 = vpop.f32.mrf.mxu1  ;;  %1875 = vst [vmem:[#allocation5] sm:$0xff] %v1843_v4  ;;  %v1472_v22 = vmul.f32 %v2198_v13, %v2816_v39  ;;  %v2850_v34 = vadd.f32 1e-05, %v1358_v5  ;;  %vm1478_vm6 = vweird.f32 %v2198_v13 }
 0x19e   :  { %v1466_v35 = vmul.f32 %v2196_v44, %v1465_v15  ;;  %1105 = vadd.xlane.f32.xlu2 %v2844_v17  ;;  %v1150_v27 = vmul.f32 %v2844_v17, %v2844_v17  ;;  %v806_v31 = vadd.f32 %v805_v20, %v692_v3  ;;  %vm1479_vm8 = vmor %vm1477_vm7, %vm1478_vm6 }
 0x19f   :  { %v1295_v23 = vmul.f32 %v2846_v18, %v2846_v18  ;;  %v1473_v29 = vmul.f32 %v2198_v13, %v1472_v22  ;;  %2199 = vrsqrt.f32 %v2850_v34  ;;  %vm1487_vm10 = vweird.f32 %v2850_v34 }
 0x1a0   :  { %v1470_v14 = vsel %vm1469_vm5, %v2196_v44, %v1466_v35  ;;  %1201 = vadd.xlane.f32.xlu1 %v1150_v27 }
 0x1a1   :  { %v1327_v30 = vsub.f32 %v1263_v25, %v1295_v23  ;;  %v1772_v32 = vmul.f32 %v1470_v14, %v1388_v36  ;;  %v1474_v40 = vmul.f32 0.5, %v1473_v29  ;;  %v918_v43 = vpop.f32.mrf.mxu2  ;;  %v1078_v45 = vpop.xlane.xlu0 %1077 }
 0x1a2   :  { %v919_v48 = vadd.f32 %v918_v43, %v806_v31  ;;  %v1031_v1 = vpop.f32.mrf.mxu3  ;;  %v2860_v24 = vmul.f32 0.0078125, %v1078_v45  ;;  %v695_v53 = vpop.f32.mrf.mxu0 }
 0x1a3   :  { %v1359_v47 = vmax.f32 %v1327_v30, 0.0  ;;  %v1808_v10 = vmul.f32 %v2827_v46, %v1772_v32  ;;  %v1475_v54 = vsub.f32 1.5, %v1474_v40 }
 0x1a4   :  { %v1174_v55 = vpop.xlane.xlu2 %1173  ;;  %v2865_v44 = vadd.f32 %v1031_v1, %v919_v48  ;;  %v1296_v57 = vmul.f32 %v2860_v24, %v2860_v24  ;;  %v1390_v1 = vsub.f32 %v2630_v28, %v2820_v38 }
 0x1a5   :  { %v2863_v56 = vadd.f32 1e-05, %v1359_v47  ;;  %v808_v58 = vpop.f32.mrf.mxu1  ;;  %v2200_v59 = vpop.eup %2199  ;;  %v1844_v61 = vadd.f32 %v2836_v49, %v1808_v10  ;;  %v1476_v63 = vmul.f32 %v2198_v13, %v1475_v54  ;;  %v1264_v0 = vmul.f32 0.0078125, %v1174_v55 }
 0x1a6   :  { %v1482_v3 = vmul.f32 %v2200_v59, %v2850_v34  ;;  %1107 = vadd.xlane.f32.xlu0 %v2865_v44  ;;  %v1151_v7 = vmul.f32 %v2865_v44, %v2865_v44  ;;  %v809_v39 = vadd.f32 %v808_v58, %v695_v53  ;;  %vm1488_vm9 = vweird.f32 %v2200_v59 }
 0x1a7   :  { %2201 = vrsqrt.f32 %v2863_v56  ;;  %1876 = vst [vmem:[#allocation5 + $0x8] sm:$0xff] %v1844_v61  ;;  %v1480_v4 = vsel %vm1479_vm8, %v2198_v13, %v1476_v63  ;;  %v1328_v5 = vsub.f32 %v1264_v0, %v1296_v57  ;;  %vm1489_vm11 = vmor %vm1487_vm10, %vm1488_vm9  ;;  %vm1497_vm13 = vweird.f32 %v2863_v56 }
 0x1a8   :  { %v1773_v8 = vmul.f32 %v1480_v4, %v1389_v2  ;;  %v1483_v15 = vmul.f32 %v2200_v59, %v1482_v3  ;;  %1203 = vadd.xlane.f32.xlu2 %v1151_v7 }
 0x1a9   :  { %v1360_v20 = vmax.f32 %v1328_v5, 0.0  ;;  %v1080_v22 = vpop.xlane.xlu1 %1079  ;;  %v921_v19 = vpop.f32.mrf.mxu2 }
 0x1aa   :  { %v1809_v12 = vmul.f32 %v2827_v46, %v1773_v8  ;;  %v1484_v35 = vmul.f32 0.5, %v1483_v15  ;;  %v2879_v23 = vmul.f32 0.0078125, %v1080_v22  ;;  %v922_v25 = vadd.f32 %v921_v19, %v809_v39  ;;  %v1034_v27 = vpop.f32.mrf.mxu3  ;;  %v698_v36 = vpop.f32.mrf.mxu0 }
 0x1ab   :  { %v2881_v13 = vadd.f32 1e-05, %v1360_v20  ;;  %v1176_v29 = vpop.xlane.xlu0 %1175 }
 0x1ac   :  { %v1845_v30 = vadd.f32 %v2836_v49, %v1809_v12  ;;  %v1485_v31 = vsub.f32 1.5, %v1484_v35  ;;  %v1297_v32 = vmul.f32 %v2879_v23, %v2879_v23  ;;  %v2889_v47 = vadd.f32 %v1034_v27, %v922_v25 }
 0x1ad   :  { %v2202_v14 = vpop.eup %2201  ;;  %v811_v40 = vpop.f32.mrf.mxu1  ;;  %2203 = vrsqrt.f32 %v2881_v13  ;;  %v1265_v48 = vmul.f32 0.0078125, %v1176_v29  ;;  %v1391_v35 = vsub.f32 %v2643_v42, %v2846_v18  ;;  %vm1507_vm0 = vweird.f32 %v2881_v13 }
 0x1ae   :  { %v1492_v43 = vmul.f32 %v2202_v14, %v2863_v56  ;;  %1877 = vst [vmem:[#allocation5 + $0x10] sm:$0xff] %v1845_v30  ;;  %v1486_v45 = vmul.f32 %v2200_v59, %v1485_v31  ;;  %v812_v54 = vadd.f32 %v811_v40, %v698_v36  ;;  %1109 = vadd.xlane.f32.xlu1 %v2889_v47  ;;  %vm1498_vm12 = vweird.f32 %v2202_v14 }
 0x1af   :  { %v1329_v55 = vsub.f32 %v1265_v48, %v1297_v32  ;;  %v1152_v57 = vmul.f32 %v2889_v47, %v2889_v47  ;;  %vm1499_vm14 = vmor %vm1497_vm13, %vm1498_vm12 }
 0x1b0   :  { %v1493_v53 = vmul.f32 %v2202_v14, %v1492_v43  ;;  %v1490_v10 = vsel %vm1489_vm11, %v2200_v59, %v1486_v45 }
 0x1b1   :  { %v1774_v58 = vmul.f32 %v1490_v10, %v1390_v1  ;;  %v1082_v63 = vpop.xlane.xlu2 %1081  ;;  %v924_v34 = vpop.f32.mrf.mxu2  ;;  %v1361_v0 = vmax.f32 %v1329_v55, 0.0  ;;  %1205 = vadd.xlane.f32.xlu0 %v1152_v57 }
 0x1b2   :  { %v1494_v61 = vmul.f32 0.5, %v1493_v53  ;;  %v2896_v2 = vmul.f32 0.0078125, %v1082_v63  ;;  %v925_v3 = vadd.f32 %v924_v34, %v812_v54  ;;  %v1037_v28 = vpop.f32.mrf.mxu3  ;;  %v701_v38 = vpop.f32.mrf.mxu0  ;;  %v1392_v34 = vsub.f32 %v2656_v51, %v2860_v24 }
 0x1b3   :  { %v2204_v4 = vpop.eup %2203  ;;  %v1810_v59 = vmul.f32 %v2827_v46, %v1774_v58  ;;  %v1178_v7 = vpop.xlane.xlu1 %1177  ;;  %v2900_v15 = vadd.f32 1e-05, %v1361_v0 }
 0x1b4   :  { %v1495_v5 = vsub.f32 1.5, %v1494_v61  ;;  %v1502_v8 = vmul.f32 %v2204_v4, %v2881_v13  ;;  %v1298_v39 = vmul.f32 %v2896_v2, %v2896_v2  ;;  %v2906_v12 = vadd.f32 %v1037_v28, %v925_v3 }
 0x1b5   :  { %v814_v20 = vpop.f32.mrf.mxu1  ;;  %v1846_v22 = vadd.f32 %v2836_v49, %v1810_v59  ;;  %2205 = vrsqrt.f32 %v2900_v15  ;;  %v1266_v27 = vmul.f32 0.0078125, %v1178_v7  ;;  %vm1508_vm15 = vweird.f32 %v2204_v4 }
 0x1b6   :  { %v1496_v19 = vmul.f32 %v2202_v14, %v1495_v5  ;;  %v1503_v25 = vmul.f32 %v2204_v4, %v1502_v8  ;;  %1111 = vadd.xlane.f32.xlu2 %v2906_v12  ;;  %v1153_v29 = vmul.f32 %v2906_v12, %v2906_v12  ;;  %v815_v32 = vadd.f32 %v814_v20, %v701_v38  ;;  %vm1509_vm1 = vmor %vm1507_vm0, %vm1508_vm15 }
 0x1b7   :  { %1878 = vst [vmem:[#allocation5 + $0x18] sm:$0xff] %v1846_v22  ;;  %v1330_v56 = vsub.f32 %v1266_v27, %v1298_v39  ;;  %vm1517_vm3 = vweird.f32 %v2900_v15 }
 0x1b8   :  { %v1500_v36 = vsel %vm1499_vm14, %v2202_v14, %v1496_v19  ;;  %v1504_v31 = vmul.f32 0.5, %v1503_v25  ;;  %1207 = vadd.xlane.f32.xlu1 %v1153_v29 }
 0x1b9   :  { %v1775_v30 = vmul.f32 %v1500_v36, %v1391_v35  ;;  %v927_v40 = vpop.f32.mrf.mxu2  ;;  %v1084_v42 = vpop.xlane.xlu0 %1083  ;;  %v1362_v45 = vmax.f32 %v1330_v56, 0.0 }
 0x1ba   :  { %v1505_v43 = vsub.f32 1.5, %v1504_v31  ;;  %v928_v48 = vadd.f32 %v927_v40, %v815_v32  ;;  %v1040_v1 = vpop.f32.mrf.mxu3  ;;  %v704_v14 = vpop.f32.mrf.mxu0  ;;  %v2916_v53 = vmul.f32 0.0078125, %v1084_v42 }
 0x1bb   :  { %v1811_v18 = vmul.f32 %v2827_v46, %v1775_v30  ;;  %v1180_v10 = vpop.xlane.xlu2 %1179  ;;  %v2206_v54 = vpop.eup %2205  ;;  %v2919_v58 = vadd.f32 1e-05, %v1362_v45 }
 0x1bc   :  { %v1506_v57 = vmul.f32 %v2204_v4, %v1505_v43  ;;  %v2921_v61 = vadd.f32 %v1040_v1, %v928_v48  ;;  %v1512_v0 = vmul.f32 %v2206_v54, %v2900_v15  ;;  %v1299_v13 = vmul.f32 %v2916_v53, %v2916_v53 }
 0x1bd   :  { %v1847_v55 = vadd.f32 %v2836_v49, %v1811_v18  ;;  %v817_v63 = vpop.f32.mrf.mxu1  ;;  %2207 = vrsqrt.f32 %v2919_v58  ;;  %v1267_v28 = vmul.f32 0.0078125, %v1180_v10  ;;  %vm1518_vm2 = vweird.f32 %v2206_v54 }
 0x1be   :  { %v1510_v3 = vsel %vm1509_vm1, %v2204_v4, %v1506_v57  ;;  %1113 = vadd.xlane.f32.xlu0 %v2921_v61  ;;  %v1513_v59 = vmul.f32 %v2206_v54, %v1512_v0  ;;  %v1154_v5 = vmul.f32 %v2921_v61, %v2921_v61  ;;  %v818_v24 = vadd.f32 %v817_v63, %v704_v14  ;;  %vm1519_vm4 = vmor %vm1517_vm3, %vm1518_vm2 }
 0x1bf   :  { %1879 = vst [vmem:[#allocation5 + $0x20] sm:$0xff] %v1847_v55  ;;  %v1776_v38 = vmul.f32 %v1510_v3, %v1392_v34  ;;  %v1331_v51 = vsub.f32 %v1267_v28, %v1299_v13  ;;  %v1393_v43 = vsub.f32 %v2669_v60, %v2879_v23  ;;  %vm1527_vm6 = vweird.f32 %v2919_v58 }
 0x1c0   :  { %v1514_v8 = vmul.f32 0.5, %v1513_v59  ;;  %1209 = vadd.xlane.f32.xlu2 %v1154_v5 }
 0x1c1   :  { %v1812_v7 = vmul.f32 %v2827_v46, %v1776_v38  ;;  %v1086_v39 = vpop.xlane.xlu1 %1085  ;;  %v930_v20 = vpop.f32.mrf.mxu2  ;;  %v1363_v22 = vmax.f32 %v1331_v51, 0.0 }
 0x1c2   :  { %v2934_v4 = vmul.f32 0.0078125, %v1086_v39  ;;  %v931_v19 = vadd.f32 %v930_v20, %v818_v24  ;;  %v1043_v35 = vpop.f32.mrf.mxu3  ;;  %v707_v25 = vpop.f32.mrf.mxu0  ;;  %v1515_v36 = vsub.f32 1.5, %v1514_v8 }
 0x1c3   :  { %v1848_v27 = vadd.f32 %v2836_v49, %v1812_v7  ;;  %v1182_v29 = vpop.xlane.xlu0 %1181  ;;  %v2208_v30 = vpop.eup %2207  ;;  %v2937_v31 = vadd.f32 1e-05, %v1363_v22  ;;  %v1394_v22 = vsub.f32 %v2682_v6, %v2896_v2 }
 0x1c4   :  { %v1300_v56 = vmul.f32 %v2934_v4, %v2934_v4  ;;  %v2941_v32 = vadd.f32 %v1043_v35, %v931_v19  ;;  %v1516_v42 = vmul.f32 %v2206_v54, %v1515_v36  ;;  %v1522_v18 = vmul.f32 %v2208_v30, %v2919_v58 }
 0x1c5   :  { %v820_v40 = vpop.f32.mrf.mxu1  ;;  %1880 = vst [vmem:[#allocation5 + $0x28] sm:$0xff] %v1848_v27  ;;  %2209 = vrsqrt.f32 %v2937_v31  ;;  %v1268_v45 = vmul.f32 0.0078125, %v1182_v29  ;;  %vm1528_vm5 = vweird.f32 %v2208_v30  ;;  %vm1537_vm9 = vweird.f32 %v2937_v31 }
 0x1c6   :  { %1115 = vadd.xlane.f32.xlu1 %v2941_v32  ;;  %v1155_v48 = vmul.f32 %v2941_v32, %v2941_v32  ;;  %v1520_v1 = vsel %vm1519_vm4, %v2206_v54, %v1516_v42  ;;  %v1523_v14 = vmul.f32 %v2208_v30, %v1522_v18  ;;  %v821_v55 = vadd.f32 %v820_v40, %v707_v25  ;;  %vm1529_vm7 = vmor %vm1527_vm6, %vm1528_vm5 }
 0x1c7   :  { %v1777_v10 = vmul.f32 %v1520_v1, %v1393_v43  ;;  %v1332_v57 = vsub.f32 %v1268_v45, %v1300_v56 }
 0x1c8   :  { %1211 = vadd.xlane.f32.xlu0 %v1155_v48  ;;  %v1524_v15 = vmul.f32 0.5, %v1523_v14 }
 0x1c9   :  { %v1088_v63 = vpop.xlane.xlu2 %1087  ;;  %v933_v34 = vpop.f32.mrf.mxu2  ;;  %v1813_v60 = vmul.f32 %v2827_v46, %v1777_v10  ;;  %v1364_v23 = vmax.f32 %v1332_v57, 0.0 }
 0x1ca   :  { %v2952_v0 = vmul.f32 0.0078125, %v1088_v63  ;;  %v934_v13 = vadd.f32 %v933_v34, %v821_v55  ;;  %v1046_v3 = vpop.f32.mrf.mxu3  ;;  %v710_v28 = vpop.f32.mrf.mxu0  ;;  %v1525_v38 = vsub.f32 1.5, %v1524_v15 }
 0x1cb   :  { %v1184_v59 = vpop.xlane.xlu1 %1183  ;;  %v2210_v54 = vpop.eup %2209  ;;  %v1849_v5 = vadd.f32 %v2836_v49, %v1813_v60  ;;  %v2955_v51 = vadd.f32 1e-05, %v1364_v23  ;;  %v1395_v23 = vsub.f32 %v2695_v16, %v2916_v53 }
 0x1cc   :  { %v1301_v24 = vmul.f32 %v2952_v0, %v2952_v0  ;;  %v1526_v8 = vmul.f32 %v2208_v30, %v1525_v38  ;;  %v1532_v39 = vmul.f32 %v2210_v54, %v2937_v31  ;;  %v2961_v20 = vadd.f32 %v1046_v3, %v934_v13 }
 0x1cd   :  { %v823_v7 = vpop.f32.mrf.mxu1  ;;  %1881 = vst [vmem:[#allocation5 + $0x30] sm:$0xff] %v1849_v5  ;;  %2211 = vrsqrt.f32 %v2955_v51  ;;  %v1269_v19 = vmul.f32 0.0078125, %v1184_v59  ;;  %vm1538_vm8 = vweird.f32 %v2210_v54  ;;  %vm1547_vm12 = vweird.f32 %v2955_v51 }
 0x1ce   :  { %v1530_v35 = vsel %vm1529_vm7, %v2208_v30, %v1526_v8  ;;  %v1533_v25 = vmul.f32 %v2210_v54, %v1532_v39  ;;  %1117 = vadd.xlane.f32.xlu2 %v2961_v20  ;;  %v1156_v27 = vmul.f32 %v2961_v20, %v2961_v20  ;;  %v824_v29 = vadd.f32 %v823_v7, %v710_v28  ;;  %vm1539_vm10 = vmor %vm1537_vm9, %vm1538_vm8 }
 0x1cf   :  { %v1778_v58 = vmul.f32 %v1530_v35, %v1394_v22  ;;  %v1333_v36 = vsub.f32 %v1269_v19, %v1301_v24 }
 0x1d0   :  { %v1534_v56 = vmul.f32 0.5, %v1533_v25  ;;  %1213 = vadd.xlane.f32.xlu1 %v1156_v27 }
 0x1d1   :  { %v936_v40 = vpop.f32.mrf.mxu2  ;;  %v1090_v42 = vpop.xlane.xlu0 %1089  ;;  %v1814_v6 = vmul.f32 %v2827_v46, %v1778_v58  ;;  %v1365_v2 = vmax.f32 %v1333_v36, 0.0 }
 0x1d2   :  { %v937_v18 = vadd.f32 %v936_v40, %v824_v29  ;;  %v1049_v43 = vpop.f32.mrf.mxu3  ;;  %v2970_v45 = vmul.f32 0.0078125, %v1090_v42  ;;  %v713_v30 = vpop.f32.mrf.mxu0  ;;  %v1535_v48 = vsub.f32 1.5, %v1534_v56 }
 0x1d3   :  { %v1186_v1 = vpop.xlane.xlu2 %1185  ;;  %v2212_v14 = vpop.eup %2211  ;;  %v1850_v10 = vadd.f32 %v2836_v49, %v1814_v6  ;;  %v2973_v55 = vadd.f32 1e-05, %v1365_v2  ;;  %v1396_v2 = vsub.f32 %v2708_v26, %v2934_v4 }
 0x1d4   :  { %v2975_v57 = vadd.f32 %v1049_v43, %v937_v18  ;;  %v1302_v15 = vmul.f32 %v2970_v45, %v2970_v45  ;;  %v1536_v34 = vmul.f32 %v2210_v54, %v1535_v48  ;;  %v1542_v60 = vmul.f32 %v2212_v14, %v2955_v51 }
 0x1d5   :  { %v826_v63 = vpop.f32.mrf.mxu1  ;;  %1882 = vst [vmem:[#allocation5 + $0x38] sm:$0xff] %v1850_v10  ;;  %2213 = vrsqrt.f32 %v2973_v55  ;;  %v1270_v13 = vmul.f32 0.0078125, %v1186_v1  ;;  %vm1548_vm11 = vweird.f32 %v2212_v14  ;;  %vm1557_vm15 = vweird.f32 %v2973_v55 }
 0x1d6   :  { %1119 = vadd.xlane.f32.xlu0 %v2975_v57  ;;  %v1540_v3 = vsel %vm1539_vm10, %v2210_v54, %v1536_v34  ;;  %v1543_v28 = vmul.f32 %v2212_v14, %v1542_v60  ;;  %v1157_v38 = vmul.f32 %v2975_v57, %v2975_v57  ;;  %v827_v31 = vadd.f32 %v826_v63, %v713_v30  ;;  %vm1549_vm13 = vmor %vm1547_vm12, %vm1548_vm11 }
 0x1d7   :  { %v1779_v59 = vmul.f32 %v1540_v3, %v1395_v23  ;;  %v1334_v5 = vsub.f32 %v1270_v13, %v1302_v15 }
 0x1d8   :  { %v1544_v24 = vmul.f32 0.5, %v1543_v28  ;;  %1215 = vadd.xlane.f32.xlu2 %v1157_v38 }
 0x1d9   :  { %v1092_v7 = vpop.xlane.xlu1 %1091  ;;  %v939_v8 = vpop.f32.mrf.mxu2  ;;  %v1815_v16 = vmul.f32 %v2827_v46, %v1779_v59  ;;  %v1366_v53 = vmax.f32 %v1334_v5, 0.0 }
 0x1da   :  { %v2988_v39 = vmul.f32 0.0078125, %v1092_v7  ;;  %v940_v22 = vadd.f32 %v939_v8, %v827_v31  ;;  %v1052_v19 = vpop.f32.mrf.mxu3  ;;  %v716_v35 = vpop.f32.mrf.mxu0  ;;  %v1545_v54 = vsub.f32 1.5, %v1544_v24 }
 0x1db   :  { %v1188_v25 = vpop.xlane.xlu0 %1187  ;;  %v2214_v27 = vpop.eup %2213  ;;  %v1851_v58 = vadd.f32 %v2836_v49, %v1815_v16  ;;  %v2991_v36 = vadd.f32 1e-05, %v1366_v53  ;;  %v1397_v53 = vsub.f32 %v2721_v41, %v2952_v0 }
 0x1dc   :  { %v1303_v29 = vmul.f32 %v2988_v39, %v2988_v39  ;;  %v1546_v40 = vmul.f32 %v2212_v14, %v1545_v54  ;;  %v1552_v42 = vmul.f32 %v2214_v27, %v2973_v55  ;;  %v2997_v6 = vadd.f32 %v1052_v19, %v940_v22 }
 0x1dd   :  { %v829_v56 = vpop.f32.mrf.mxu1  ;;  %1883 = vst [vmem:[#allocation5 + $0x40] sm:$0xff] %v1851_v58  ;;  %2215 = vrsqrt.f32 %v2991_v36  ;;  %v1271_v18 = vmul.f32 0.0078125, %v1188_v25  ;;  %vm1558_vm14 = vweird.f32 %v2214_v27  ;;  %vm1567_vm2 = vweird.f32 %v2991_v36 }
 0x1de   :  { %v1550_v43 = vsel %vm1549_vm13, %v2212_v14, %v1546_v40  ;;  %v1553_v30 = vmul.f32 %v2214_v27, %v1552_v42  ;;  %1121 = vadd.xlane.f32.xlu1 %v2997_v6  ;;  %v1158_v48 = vmul.f32 %v2997_v6, %v2997_v6  ;;  %v830_v1 = vadd.f32 %v829_v56, %v716_v35  ;;  %vm1559_vm0 = vmor %vm1557_vm15, %vm1558_vm14 }
 0x1df   :  { %v1780_v51 = vmul.f32 %v1550_v43, %v1396_v2  ;;  %v1335_v10 = vsub.f32 %v1271_v18, %v1303_v29 }
 0x1e0   :  { %v1554_v15 = vmul.f32 0.5, %v1553_v30  ;;  %1217 = vadd.xlane.f32.xlu0 %v1158_v48 }
 0x1e1   :  { %v1094_v63 = vpop.xlane.xlu2 %1093  ;;  %v942_v34 = vpop.f32.mrf.mxu2  ;;  %v1816_v26 = vmul.f32 %v2827_v46, %v1780_v51  ;;  %v1367_v4 = vmax.f32 %v1335_v10, 0.0 }
 0x1e2   :  { %v3006_v60 = vmul.f32 0.0078125, %v1094_v63  ;;  %v943_v23 = vadd.f32 %v942_v34, %v830_v1  ;;  %v1055_v14 = vpop.f32.mrf.mxu3  ;;  %v719_v13 = vpop.f32.mrf.mxu0  ;;  %v1555_v3 = vsub.f32 1.5, %v1554_v15 }
 0x1e3   :  { %v1190_v28 = vpop.xlane.xlu1 %1189  ;;  %v2216_v38 = vpop.eup %2215  ;;  %v1852_v59 = vadd.f32 %v2836_v49, %v1816_v26  ;;  %v3009_v5 = vadd.f32 1e-05, %v1367_v4  ;;  %v1398_v4 = vsub.f32 %v2734_v52, %v2970_v45 }
 0x1e4   :  { %v1304_v31 = vmul.f32 %v3006_v60, %v3006_v60  ;;  %v1556_v7 = vmul.f32 %v2214_v27, %v1555_v3  ;;  %v1562_v8 = vmul.f32 %v2216_v38, %v2991_v36  ;;  %v3015_v16 = vadd.f32 %v1055_v14, %v943_v23 }
 0x1e5   :  { %v832_v24 = vpop.f32.mrf.mxu1  ;;  %1884 = vst [vmem:[#allocation5 + $0x48] sm:$0xff] %v1852_v59  ;;  %2217 = vrsqrt.f32 %v3009_v5  ;;  %v1272_v22 = vmul.f32 0.0078125, %v1190_v28  ;;  %vm1568_vm1 = vweird.f32 %v2216_v38  ;;  %vm1577_vm5 = vweird.f32 %v3009_v5 }
 0x1e6   :  { %v1560_v19 = vsel %vm1559_vm0, %v2214_v27, %v1556_v7  ;;  %v1563_v35 = vmul.f32 %v2216_v38, %v1562_v8  ;;  %1123 = vadd.xlane.f32.xlu2 %v3015_v16  ;;  %v1159_v54 = vmul.f32 %v3015_v16, %v3015_v16  ;;  %v833_v58 = vadd.f32 %v832_v24, %v719_v13  ;;  %vm1569_vm3 = vmor %vm1567_vm2, %vm1568_vm1 }
 0x1e7   :  { %v1781_v55 = vmul.f32 %v1560_v19, %v1397_v53  ;;  %v1336_v25 = vsub.f32 %v1272_v22, %v1304_v31 }
 0x1e8   :  { %v1564_v29 = vmul.f32 0.5, %v1563_v35  ;;  %1219 = vadd.xlane.f32.xlu1 %v1159_v54 }
 0x1e9   :  { %v945_v56 = vpop.f32.mrf.mxu2  ;;  %v1096_v40 = vpop.xlane.xlu0 %1095  ;;  %v1817_v41 = vmul.f32 %v2827_v46, %v1781_v55  ;;  %v1368_v0 = vmax.f32 %v1336_v25, 0.0 }
 0x1ea   :  { %v946_v42 = vadd.f32 %v945_v56, %v833_v58  ;;  %v1058_v2 = vpop.f32.mrf.mxu3  ;;  %v3024_v18 = vmul.f32 0.0078125, %v1096_v40  ;;  %v1565_v27 = vsub.f32 1.5, %v1564_v29  ;;  %v722_v30 = vpop.f32.mrf.mxu0 }
 0x1eb   :  { %v1192_v43 = vpop.xlane.xlu2 %1191  ;;  %v2218_v48 = vpop.eup %2217  ;;  %v1853_v51 = vadd.f32 %v2836_v49, %v1817_v41  ;;  %v3027_v1 = vadd.f32 1e-05, %v1368_v0  ;;  %v1399_v41 = vsub.f32 %v2747_v62, %v2988_v39 }
 0x1ec   :  { %v3029_v10 = vadd.f32 %v1058_v2, %v946_v42  ;;  %v1305_v15 = vmul.f32 %v3024_v18, %v3024_v18  ;;  %v1566_v34 = vmul.f32 %v2216_v38, %v1565_v27  ;;  %v1572_v26 = vmul.f32 %v2218_v48, %v3009_v5 }
 0x1ed   :  { %v835_v63 = vpop.f32.mrf.mxu1  ;;  %1885 = vst [vmem:[#allocation5 + $0x50] sm:$0xff] %v1853_v51  ;;  %2219 = vrsqrt.f32 %v3027_v1  ;;  %v1273_v23 = vmul.f32 0.0078125, %v1192_v43  ;;  %vm1578_vm4 = vweird.f32 %v2218_v48  ;;  %vm1587_vm8 = vweird.f32 %v3027_v1 }
 0x1ee   :  { %1125 = vadd.xlane.f32.xlu0 %v3029_v10  ;;  %v1570_v14 = vsel %vm1569_vm3, %v2216_v38, %v1566_v34  ;;  %v1573_v13 = vmul.f32 %v2218_v48, %v1572_v26  ;;  %v836_v59 = vadd.f32 %v835_v63, %v722_v30  ;;  %vm1579_vm6 = vmor %vm1577_vm5, %vm1578_vm4 }
 0x1ef   :  { %v1782_v3 = vmul.f32 %v1570_v14, %v1398_v4  ;;  %v1337_v28 = vsub.f32 %v1273_v23, %v1305_v15 }
 0x1f0   :  { %v1574_v31 = vmul.f32 0.5, %v1573_v13 }
 0x1f1   :  { %v1098_v24 = vpop.xlane.xlu1 %1097  ;;  %v948_v36 = vpop.f32.mrf.mxu2  ;;  %v1818_v7 = vmul.f32 %v2827_v46, %v1782_v3  ;;  %v1369_v8 = vmax.f32 %v1337_v28, 0.0 }
 0x1f2   :  { %v3040_v53 = vmul.f32 0.0078125, %v1098_v24  ;;  %v949_v52 = vadd.f32 %v948_v36, %v836_v59  ;;  %v1061_v45 = vpop.f32.mrf.mxu3  ;;  %v1575_v22 = vsub.f32 1.5, %v1574_v31  ;;  %v725_v56 = vpop.f32.mrf.mxu0  ;;  %v1400_v36 = vsub.f32 %v2760_v9, %v3006_v60 }
 0x1f3   :  { %v1194_v19 = vpop.xlane.xlu0 %1193  ;;  %v2220_v35 = vpop.eup %2219  ;;  %v1854_v38 = vadd.f32 %v2836_v49, %v1818_v7  ;;  %v3043_v54 = vadd.f32 1e-05, %v1369_v8 }
 0x1f4   :  { %v1306_v55 = vmul.f32 %v3040_v53, %v3040_v53  ;;  %v1576_v25 = vmul.f32 %v2218_v48, %v1575_v22  ;;  %v1582_v58 = vmul.f32 %v2220_v35, %v3027_v1  ;;  %v3049_v29 = vadd.f32 %v1061_v45, %v949_v52 }
 0x1f5   :  { %v838_v40 = vpop.f32.mrf.mxu1  ;;  %1886 = vst [vmem:[#allocation5 + $0x58] sm:$0xff] %v1854_v38  ;;  %2221 = vrsqrt.f32 %v3043_v54  ;;  %v1274_v0 = vmul.f32 0.0078125, %v1194_v19  ;;  %vm1588_vm7 = vweird.f32 %v2220_v35  ;;  %vm1597_vm11 = vweird.f32 %v3043_v54 }
 0x1f6   :  { %v1580_v42 = vsel %vm1579_vm6, %v2218_v48, %v1576_v25  ;;  %v1583_v2 = vmul.f32 %v2220_v35, %v1582_v58  ;;  %1127 = vadd.xlane.f32.xlu1 %v3049_v29  ;;  %v1161_v5 = vmul.f32 %v3049_v29, %v3049_v29  ;;  %v839_v43 = vadd.f32 %v838_v40, %v725_v56  ;;  %vm1589_vm9 = vmor %vm1587_vm8, %vm1588_vm7 }
 0x1f7   :  { %v1783_v27 = vmul.f32 %v1580_v42, %v1399_v41  ;;  %v1338_v30 = vsub.f32 %v1274_v0, %v1306_v55  ;;  %v1160_v0 = vmul.f32 %v3029_v10, %v3029_v10 }
 0x1f8   :  { %v1584_v51 = vmul.f32 0.5, %v1583_v2  ;;  %1223 = vadd.xlane.f32.xlu0 %v1161_v5 }
 0x1f9   :  { %v1100_v15 = vpop.xlane.xlu2 %1099  ;;  %v951_v63 = vpop.f32.mrf.mxu2  ;;  %v1819_v62 = vmul.f32 %v2827_v46, %v1783_v27  ;;  %v1370_v39 = vmax.f32 %v1338_v30, 0.0  ;;  %v1401_v27 = vsub.f32 %v2773_v21, %v3024_v18 }
 0x1fa   :  { %v3058_v34 = vmul.f32 0.0078125, %v1100_v15  ;;  %v952_v26 = vadd.f32 %v951_v63, %v839_v43  ;;  %v1585_v48 = vsub.f32 1.5, %v1584_v51  ;;  %v1064_v28 = vpop.f32.mrf.mxu3 }
 0x1fb   :  { %v1196_v4 = vpop.xlane.xlu1 %1195  ;;  %v2222_v23 = vpop.eup %2221  ;;  %v1855_v14 = vadd.f32 %v2836_v49, %v1819_v62  ;;  %v3061_v13 = vadd.f32 1e-05, %v1370_v39 }
 0x1fc   :  { %v1307_v3 = vmul.f32 %v3058_v34, %v3058_v34  ;;  %v1586_v59 = vmul.f32 %v2220_v35, %v1585_v48  ;;  %v1592_v31 = vmul.f32 %v2222_v23, %v3043_v54  ;;  %v3067_v24 = vadd.f32 %v1064_v28, %v952_v26 }
 0x1fd   :  { %1887 = vst [vmem:[#allocation5 + $0x60] sm:$0xff] %v1855_v14  ;;  %2223 = vrsqrt.f32 %v3061_v13  ;;  %v1275_v7 = vmul.f32 0.0078125, %v1196_v4  ;;  %vm1598_vm10 = vweird.f32 %v2222_v23  ;;  %vm1607_vm14 = vweird.f32 %v3061_v13 }
 0x1fe   :  { %v1590_v8 = vsel %vm1589_vm9, %v2220_v35, %v1586_v59  ;;  %v1593_v52 = vmul.f32 %v2222_v23, %v1592_v31  ;;  %1129 = vadd.xlane.f32.xlu2 %v3067_v24  ;;  %v1162_v45 = vmul.f32 %v3067_v24, %v3067_v24  ;;  %vm1599_vm12 = vmor %vm1597_vm11, %vm1598_vm10  ;;  %v1402_v59 = vsub.f32 %v2790_v37, %v3040_v53 }
 0x1ff   :  { %v1784_v1 = vmul.f32 %v1590_v8, %v1400_v36  ;;  %v1339_v22 = vsub.f32 %v1275_v7, %v1307_v3 }
 0x200   :  { %v1594_v19 = vmul.f32 0.5, %v1593_v52  ;;  %1225 = vadd.xlane.f32.xlu1 %v1162_v45 }
 0x201   :  { %v1102_v38 = vpop.xlane.xlu0 %1101  ;;  %v1820_v55 = vmul.f32 %v2827_v46, %v1784_v1  ;;  %v1371_v25 = vmax.f32 %v1339_v22, 0.0 }
 0x202   :  { %v3076_v9 = vmul.f32 0.0078125, %v1102_v38  ;;  %v1595_v60 = vsub.f32 1.5, %v1594_v19 }
 0x203   :  { %v1198_v58 = vpop.xlane.xlu2 %1197  ;;  %v2224_v35 = vpop.eup %2223  ;;  %v1856_v56 = vadd.f32 %v2836_v49, %v1820_v55  ;;  %v1435_v40 = vadd.f32 1e-05, %v1371_v25 }
 0x204   :  { %v1308_v41 = vmul.f32 %v3076_v9, %v3076_v9  ;;  %v1596_v42 = vmul.f32 %v2222_v23, %v1595_v60  ;;  %v1602_v2 = vmul.f32 %v2224_v35, %v3061_v13  ;;  %v1276_v5 = vmul.f32 0.0078125, %v1198_v58 }
 0x205   :  { %1888 = vst [vmem:[#allocation5 + $0x68] sm:$0xff] %v1856_v56  ;;  %2225 = vrsqrt.f32 %v1435_v40  ;;  %vm1608_vm13 = vweird.f32 %v2224_v35  ;;  %vm1617_vm1 = vweird.f32 %v1435_v40 }
 0x206   :  { %v1600_v43 = vsel %vm1599_vm12, %v2222_v23, %v1596_v42  ;;  %v1603_v30 = vmul.f32 %v2224_v35, %v1602_v2  ;;  %v1340_v51 = vsub.f32 %v1276_v5, %v1308_v41  ;;  %1221 = vadd.xlane.f32.xlu2 %v1160_v0  ;;  %vm1609_vm15 = vmor %vm1607_vm14, %vm1608_vm13 }
 0x207   :  { %v1785_v15 = vmul.f32 %v1600_v43, %v1401_v27 }
 0x208   :  { %v1604_v63 = vmul.f32 0.5, %v1603_v30  ;;  %v1372_v62 = vmax.f32 %v1340_v51, 0.0 }
 0x209   :  { %v1104_v39 = vpop.xlane.xlu1 %1103  ;;  %v1821_v26 = vmul.f32 %v2827_v46, %v1785_v15  ;;  %v3115_v15 = vld [vmem:[%s3223_s3] ss:$0 sm:$0xff] }
 0x20a   :  { %v3088_v54 = vmul.f32 0.0078125, %v1104_v39  ;;  %v1605_v48 = vsub.f32 1.5, %v1604_v63  ;;  %v1436_v4 = vadd.f32 1e-05, %v1372_v62 }
 0x20b   :  { %v2226_v14 = vpop.eup %2225  ;;  %v1857_v21 = vadd.f32 %v2836_v49, %v1821_v26  ;;  %v1200_v28 = vpop.xlane.xlu0 %1199 }
 0x20c   :  { %v1309_v18 = vmul.f32 %v3088_v54, %v3088_v54  ;;  %v1606_v23 = vmul.f32 %v2224_v35, %v1605_v48  ;;  %v1612_v3 = vmul.f32 %v2226_v14, %v1435_v40  ;;  %2227 = vrsqrt.f32 %v1436_v4  ;;  %v3107_v40 = vld [vmem:[%s3222_s2] ss:$0 sm:$0xff]  ;;  %s2316_s2 = smov [#allocation5]  }
 0x20d   :  { %1889 = vst [vmem:[#allocation5 + $0x70] sm:$0xff] %v1857_v21  ;;  %v1277_v31 = vmul.f32 0.0078125, %v1200_v28  ;;  %vm1618_vm0 = vweird.f32 %v2226_v14  ;;  %vm1627_vm4 = vweird.f32 %v1436_v4  ;;  %v1404_v48 = vsub.f32 %v2804_v11, %v3076_v9  ;;  %s1911_s3 = sshll.u32 %s2316_s2, 4  ;;  %s1912_s3 = int_to_ptr.vmem [resolvable:$true] %s1911_s3 }
 0x20e   :  { %v1610_v36 = vsel %vm1609_vm15, %v2224_v35, %v1606_v23  ;;  %v1613_v7 = vmul.f32 %v2226_v14, %v1612_v3  ;;  %vm1619_vm2 = vmor %vm1617_vm1, %vm1618_vm0 }
 0x20f   :  { %v1786_v8 = vmul.f32 %v1610_v36, %v1402_v59  ;;  %v1341_v52 = vsub.f32 %v1277_v31, %v1309_v18 }
 0x210   :  { %v1614_v45 = vmul.f32 0.5, %v1613_v7 }
 0x211   :  { %v1106_v1 = vpop.xlane.xlu2 %1105  ;;  %v1822_v22 = vmul.f32 %v2827_v46, %v1786_v8  ;;  %v1373_v19 = vmax.f32 %v1341_v52, 0.0  ;;  %v1403_v46 = vsub.f32 %v2795_v50, %v3058_v34 }
 0x212   :  { %v3097_v38 = vmul.f32 0.0078125, %v1106_v1  ;;  %v2228_v13 = vpop.eup %2227  ;;  %v1615_v55 = vsub.f32 1.5, %v1614_v45 }
 0x213   :  { %v1202_v25 = vpop.xlane.xlu1 %1201  ;;  %v1858_v60 = vadd.f32 %v2836_v49, %v1822_v22  ;;  %v1622_v37 = vmul.f32 %v2228_v13, %v1436_v4  ;;  %v1437_v53 = vadd.f32 1e-05, %v1373_v19  ;;  %vm1628_vm3 = vweird.f32 %v2228_v13 }
 0x214   :  { %v1616_v58 = vmul.f32 %v2226_v14, %v1615_v55  ;;  %v1310_v35 = vmul.f32 %v3097_v38, %v3097_v38  ;;  %v1278_v56 = vmul.f32 0.0078125, %v1202_v25  ;;  %vm1629_vm5 = vmor %vm1627_vm4, %vm1628_vm3  ;;  %v1405_v19 = vsub.f32 %v2818_v33, %v3088_v54 }
 0x215   :  { %1890 = vst [vmem:[#allocation5 + $0x78] sm:$0xff] %v1858_v60  ;;  %v1623_v41 = vmul.f32 %v2228_v13, %v1622_v37  ;;  %2229 = vrsqrt.f32 %v1437_v53  ;;  %vm1637_vm7 = vweird.f32 %v1437_v53 }
 0x216   :  { %v1620_v0 = vsel %vm1619_vm2, %v2226_v14, %v1616_v58  ;;  %v1342_v42 = vsub.f32 %v1278_v56, %v1310_v35 }
 0x217   :  { %v1787_v2 = vmul.f32 %v1620_v0, %v1403_v46  ;;  %v1624_v5 = vmul.f32 0.5, %v1623_v41 }
 0x218   :  { %v1374_v49 = vmax.f32 %v1342_v42, 0.0 }
 0x219   :  { %v1108_v27 = vpop.xlane.xlu0 %1107  ;;  %v1823_v43 = vmul.f32 %v3107_v40, %v1787_v2  ;;  %v1625_v30 = vsub.f32 1.5, %v1624_v5  ;;  %v1406_v5 = vsub.f32 %v2844_v17, %v3097_v38 }
 0x21a   :  { %v3110_v51 = vmul.f32 0.0078125, %v1108_v27  ;;  %v1438_v50 = vadd.f32 1e-05, %v1374_v49 }
 0x21b   :  { %v2230_v34 = vpop.eup %2229  ;;  %v1859_v63 = vadd.f32 %v3115_v15, %v1823_v43  ;;  %v1626_v62 = vmul.f32 %v2228_v13, %v1625_v30  ;;  %v1204_v26 = vpop.xlane.xlu2 %1203 }
 0x21c   :  { %v1311_v39 = vmul.f32 %v3110_v51, %v3110_v51  ;;  %v1632_v14 = vmul.f32 %v2230_v34, %v1437_v53  ;;  %2231 = vrsqrt.f32 %v1438_v50  ;;  %v1279_v18 = vmul.f32 0.0078125, %v1204_v26 }
 0x21d   :  { %1891 = vst [vmem:[#allocation5 + $0x80] sm:$0xff] %v1859_v63  ;;  %v1630_v21 = vsel %vm1629_vm5, %v2228_v13, %v1626_v62  ;;  %vm1638_vm6 = vweird.f32 %v2230_v34  ;;  %vm1647_vm10 = vweird.f32 %v1438_v50 }
 0x21e   :  { %v1788_v23 = vmul.f32 %v1630_v21, %v1404_v48  ;;  %v1633_v3 = vmul.f32 %v2230_v34, %v1632_v14  ;;  %v1343_v28 = vsub.f32 %v1279_v18, %v1311_v39  ;;  %vm1639_vm8 = vmor %vm1637_vm7, %vm1638_vm6 }
 0x220   :  { %v1824_v59 = vmul.f32 %v3107_v40, %v1788_v23  ;;  %v1634_v31 = vmul.f32 0.5, %v1633_v3  ;;  %v1375_v4 = vmax.f32 %v1343_v28, 0.0 }
 0x221   :  { %v1110_v52 = vpop.xlane.xlu1 %1109 }
 0x222   :  { %v2232_v36 = vpop.eup %2231  ;;  %v1860_v7 = vadd.f32 %v3115_v15, %v1824_v59  ;;  %v1635_v8 = vsub.f32 1.5, %v1634_v31  ;;  %v1439_v9 = vadd.f32 1e-05, %v1375_v4  ;;  %v3124_v45 = vmul.f32 0.0078125, %v1110_v52 }
 0x223   :  { %v1642_v11 = vmul.f32 %v2232_v36, %v1438_v50  ;;  %vm1648_vm9 = vweird.f32 %v2232_v36  ;;  %v1407_v4 = vsub.f32 %v2865_v44, %v3110_v51 }
 0x224   :  { %1892 = vst [vmem:[#allocation5 + $0x88] sm:$0xff] %v1860_v7  ;;  %v1636_v1 = vmul.f32 %v2230_v34, %v1635_v8  ;;  %v1206_v22 = vpop.xlane.xlu0 %1205  ;;  %2233 = vrsqrt.f32 %v1439_v9  ;;  %v1312_v55 = vmul.f32 %v3124_v45, %v3124_v45  ;;  %vm1649_vm11 = vmor %vm1647_vm10, %vm1648_vm9  ;;  %vm1657_vm13 = vweird.f32 %v1439_v9 }
 0x225   :  { %v1643_v13 = vmul.f32 %v2232_v36, %v1642_v11  ;;  %v1280_v60 = vmul.f32 0.0078125, %v1206_v22 }
 0x226   :  { %v1640_v25 = vsel %vm1639_vm8, %v2230_v34, %v1636_v1 }
 0x227   :  { %v1789_v37 = vmul.f32 %v1640_v25, %v1405_v19  ;;  %v1644_v58 = vmul.f32 0.5, %v1643_v13  ;;  %v1344_v35 = vsub.f32 %v1280_v60, %v1312_v55 }
 0x229   :  { %v1825_v56 = vmul.f32 %v3107_v40, %v1789_v37  ;;  %v1645_v46 = vsub.f32 1.5, %v1644_v58  ;;  %v1112_v53 = vpop.xlane.xlu2 %1111  ;;  %v1376_v41 = vmax.f32 %v1344_v35, 0.0 }
 0x22a   :  { %v3131_v0 = vmul.f32 0.0078125, %v1112_v53  ;;  %v2234_v33 = vpop.eup %2233 }
 0x22b   :  { %v1861_v54 = vadd.f32 %v3115_v15, %v1825_v56  ;;  %v1646_v42 = vmul.f32 %v2232_v36, %v1645_v46  ;;  %v1208_v2 = vpop.xlane.xlu1 %1207  ;;  %v1652_v49 = vmul.f32 %v2234_v33, %v1439_v9  ;;  %v1440_v27 = vadd.f32 1e-05, %v1376_v41 }
 0x22c   :  { %v1313_v43 = vmul.f32 %v3131_v0, %v3131_v0  ;;  %v1281_v34 = vmul.f32 0.0078125, %v1208_v2  ;;  %vm1658_vm12 = vweird.f32 %v2234_v33  ;;  %v1408_v46 = vsub.f32 %v2889_v47, %v3124_v45 }
 0x22d   :  { %1893 = vst [vmem:[#allocation5 + $0x90] sm:$0xff] %v1861_v54  ;;  %v1650_v30 = vsel %vm1649_vm11, %v2232_v36, %v1646_v42  ;;  %v1653_v62 = vmul.f32 %v2234_v33, %v1652_v49  ;;  %2235 = vrsqrt.f32 %v1440_v27  ;;  %vm1659_vm14 = vmor %vm1657_vm13, %vm1658_vm12  ;;  %vm1667_vm0 = vweird.f32 %v1440_v27 }
 0x22e   :  { %v1790_v63 = vmul.f32 %v1650_v30, %v1406_v5  ;;  %v1345_v39 = vsub.f32 %v1281_v34, %v1313_v43 }
 0x22f   :  { %v1654_v50 = vmul.f32 0.5, %v1653_v62 }
 0x230   :  { %v1826_v26 = vmul.f32 %v3107_v40, %v1790_v63  ;;  %v1377_v14 = vmax.f32 %v1345_v39, 0.0 }
 0x231   :  { %v1114_v48 = vpop.xlane.xlu0 %1113  ;;  %v1655_v38 = vsub.f32 1.5, %v1654_v50 }
 0x232   :  { %v3139_v21 = vmul.f32 0.0078125, %v1114_v48  ;;  %v1862_v17 = vadd.f32 %v3115_v15, %v1826_v26  ;;  %v1441_v18 = vadd.f32 1e-05, %v1377_v14  ;;  %v1409_v26 = vsub.f32 %v2906_v12, %v3131_v0 }
 0x233   :  { %v1210_v3 = vpop.xlane.xlu2 %1209  ;;  %v2236_v28 = vpop.eup %2235  ;;  %v1656_v59 = vmul.f32 %v2234_v33, %v1655_v38 }
 0x234   :  { %v1314_v23 = vmul.f32 %v3139_v21, %v3139_v21  ;;  %1894 = vst [vmem:[#allocation5 + $0x98] sm:$0xff] %v1862_v17  ;;  %v1282_v31 = vmul.f32 0.0078125, %v1210_v3  ;;  %v1662_v36 = vmul.f32 %v2236_v28, %v1440_v27  ;;  %2237 = vrsqrt.f32 %v1441_v18 }
 0x235   :  { %v1660_v7 = vsel %vm1659_vm14, %v2234_v33, %v1656_v59  ;;  %vm1668_vm15 = vweird.f32 %v2236_v28  ;;  %vm1677_vm3 = vweird.f32 %v1441_v18 }
 0x236   :  { %v1346_v8 = vsub.f32 %v1282_v31, %v1314_v23  ;;  %v1791_v52 = vmul.f32 %v1660_v7, %v1407_v4  ;;  %v1663_v11 = vmul.f32 %v2236_v28, %v1662_v36  ;;  %vm1669_vm1 = vmor %vm1667_vm0, %vm1668_vm15 }
 0x238   :  { %v1378_v1 = vmax.f32 %v1346_v8, 0.0  ;;  %v1827_v19 = vmul.f32 %v3107_v40, %v1791_v52  ;;  %v1664_v13 = vmul.f32 0.5, %v1663_v11  ;;  %v1410_v52 = vsub.f32 %v2921_v61, %v3139_v21 }
 0x239   :  { %v1116_v22 = vpop.xlane.xlu1 %1115 }
 0x23a   :  { %v3147_v55 = vmul.f32 0.0078125, %v1116_v22  ;;  %v1442_v25 = vadd.f32 1e-05, %v1378_v1  ;;  %v2238_v60 = vpop.eup %2237  ;;  %v1863_v37 = vadd.f32 %v3115_v15, %v1827_v19  ;;  %v1665_v44 = vsub.f32 1.5, %v1664_v13 }
 0x23b   :  { %v1212_v9 = vpop.xlane.xlu0 %1211  ;;  %v1672_v58 = vmul.f32 %v2238_v60, %v1441_v18  ;;  %vm1678_vm2 = vweird.f32 %v2238_v60 }
 0x23c   :  { %v1315_v51 = vmul.f32 %v3147_v55, %v3147_v55  ;;  %2239 = vrsqrt.f32 %v1442_v25  ;;  %1895 = vst [vmem:[#allocation5 + $0xa0] sm:$0xff] %v1863_v37  ;;  %v1666_v35 = vmul.f32 %v2236_v28, %v1665_v44  ;;  %v1283_v56 = vmul.f32 0.0078125, %v1212_v9  ;;  %vm1679_vm4 = vmor %vm1677_vm3, %vm1678_vm2 }
 0x23d   :  { %v1673_v53 = vmul.f32 %v2238_v60, %v1672_v58  ;;  %vm1687_vm6 = vweird.f32 %v1442_v25 }
 0x23e   :  { %v1670_v41 = vsel %vm1669_vm1, %v2236_v28, %v1666_v35  ;;  %v1347_v33 = vsub.f32 %v1283_v56, %v1315_v51 }
 0x23f   :  { %v1792_v54 = vmul.f32 %v1670_v41, %v1408_v46  ;;  %v1674_v42 = vmul.f32 0.5, %v1673_v53  ;;  %v1411_v41 = vsub.f32 %v2941_v32, %v3147_v55 }
 0x240   :  { %v1379_v2 = vmax.f32 %v1347_v33, 0.0 }
 0x241   :  { %v1118_v5 = vpop.xlane.xlu2 %1117  ;;  %v1828_v43 = vmul.f32 %v3107_v40, %v1792_v54  ;;  %v1675_v30 = vsub.f32 1.5, %v1674_v42 }
 0x242   :  { %v2240_v49 = vpop.eup %2239  ;;  %v3155_v34 = vmul.f32 0.0078125, %v1118_v5  ;;  %v1443_v63 = vadd.f32 1e-05, %v1379_v2 }
 0x243   :  { %v1682_v27 = vmul.f32 %v2240_v49, %v1442_v25  ;;  %v1214_v62 = vpop.xlane.xlu1 %1213  ;;  %v1864_v47 = vadd.f32 %v3115_v15, %v1828_v43  ;;  %v1676_v45 = vmul.f32 %v2238_v60, %v1675_v30  ;;  %vm1688_vm5 = vweird.f32 %v2240_v49 }
 0x244   :  { %v1316_v39 = vmul.f32 %v3155_v34, %v3155_v34  ;;  %2241 = vrsqrt.f32 %v1443_v63  ;;  %v1284_v48 = vmul.f32 0.0078125, %v1214_v62  ;;  %vm1689_vm7 = vmor %vm1687_vm6, %vm1688_vm5  ;;  %vm1697_vm9 = vweird.f32 %v1443_v63 }
 0x245   :  { %v1683_v50 = vmul.f32 %v2240_v49, %v1682_v27  ;;  %1896 = vst [vmem:[#allocation5 + $0xa8] sm:$0xff] %v1864_v47  ;;  %v1680_v14 = vsel %vm1679_vm4, %v2238_v60, %v1676_v45 }
 0x246   :  { %v1793_v17 = vmul.f32 %v1680_v14, %v1409_v26  ;;  %v1348_v23 = vsub.f32 %v1284_v48, %v1316_v39 }
 0x247   :  { %v1684_v38 = vmul.f32 0.5, %v1683_v50 }
 0x248   :  { %v1829_v28 = vmul.f32 %v3107_v40, %v1793_v17  ;;  %v1380_v59 = vmax.f32 %v1348_v23, 0.0  ;;  %v1412_v17 = vsub.f32 %v2961_v20, %v3155_v34 }
 0x249   :  { %v1120_v3 = vpop.xlane.xlu0 %1119  ;;  %v1685_v18 = vsub.f32 1.5, %v1684_v38 }
 0x24a   :  { %v3163_v31 = vmul.f32 0.0078125, %v1120_v3  ;;  %v2242_v4 = vpop.eup %2241  ;;  %v1865_v12 = vadd.f32 %v3115_v15, %v1829_v28  ;;  %v1444_v36 = vadd.f32 1e-05, %v1380_v59 }
 0x24b   :  { %v1686_v0 = vmul.f32 %v2240_v49, %v1685_v18  ;;  %v1216_v8 = vpop.xlane.xlu2 %1215  ;;  %v1692_v11 = vmul.f32 %v2242_v4, %v1443_v63  ;;  %vm1698_vm8 = vweird.f32 %v2242_v4 }
 0x24c   :  { %v1317_v7 = vmul.f32 %v3163_v31, %v3163_v31  ;;  %v1285_v1 = vmul.f32 0.0078125, %v1216_v8  ;;  %1897 = vst [vmem:[#allocation5 + $0xb0] sm:$0xff] %v1865_v12  ;;  %2243 = vrsqrt.f32 %v1444_v36  ;;  %vm1699_vm10 = vmor %vm1697_vm9, %vm1698_vm8  ;;  %vm1707_vm12 = vweird.f32 %v1444_v36 }
 0x24d   :  { %v1690_v22 = vsel %vm1689_vm7, %v2240_v49, %v1686_v0  ;;  %v1693_v13 = vmul.f32 %v2242_v4, %v1692_v11  ;;  %v1413_v20 = vsub.f32 %v2975_v57, %v3163_v31 }
 0x24e   :  { %v1794_v19 = vmul.f32 %v1690_v22, %v1410_v52  ;;  %v1349_v25 = vsub.f32 %v1285_v1, %v1317_v7 }
 0x24f   :  { %v1694_v60 = vmul.f32 0.5, %v1693_v13 }
 0x250   :  { %v1830_v9 = vmul.f32 %v3107_v40, %v1794_v19  ;;  %v1381_v37 = vmax.f32 %v1349_v25, 0.0 }
 0x251   :  { %v1122_v44 = vpop.xlane.xlu1 %1121  ;;  %v1695_v58 = vsub.f32 1.5, %v1694_v60 }
 0x252   :  { %v1866_v51 = vadd.f32 %v3115_v15, %v1830_v9  ;;  %v1445_v35 = vadd.f32 1e-05, %v1381_v37  ;;  %v3172_v61 = vmul.f32 0.0078125, %v1122_v44  ;;  %v2244_v21 = vpop.eup %2243 }
 0x253   :  { %v1218_v56 = vpop.xlane.xlu0 %1217  ;;  %v1696_v46 = vmul.f32 %v2242_v4, %v1695_v58  ;;  %v1702_v53 = vmul.f32 %v2244_v21, %v1444_v36  ;;  %vm1708_vm11 = vweird.f32 %v2244_v21 }
 0x254   :  { %1898 = vst [vmem:[#allocation5 + $0xb8] sm:$0xff] %v1866_v51  ;;  %2245 = vrsqrt.f32 %v1445_v35  ;;  %v1318_v33 = vmul.f32 %v3172_v61, %v3172_v61  ;;  %v1286_v54 = vmul.f32 0.0078125, %v1218_v56  ;;  %vm1709_vm13 = vmor %vm1707_vm12, %vm1708_vm11  ;;  %vm1717_vm15 = vweird.f32 %v1445_v35 }
 0x255   :  { %v1700_v42 = vsel %vm1699_vm10, %v2242_v4, %v1696_v46  ;;  %v1703_v2 = vmul.f32 %v2244_v21, %v1702_v53 }
 0x256   :  { %v1795_v5 = vmul.f32 %v1700_v42, %v1411_v41  ;;  %v1350_v49 = vsub.f32 %v1286_v54, %v1318_v33 }
 0x257   :  { %v1704_v43 = vmul.f32 0.5, %v1703_v2 }
 0x258   :  { %v1831_v30 = vmul.f32 %v3107_v40, %v1795_v5  ;;  %v1382_v27 = vmax.f32 %v1350_v49, 0.0 }
 0x259   :  { %v1124_v62 = vpop.xlane.xlu2 %1123  ;;  %v1705_v47 = vsub.f32 1.5, %v1704_v43 }
 0x25a   :  { %v2246_v63 = vpop.eup %2245  ;;  %v3179_v45 = vmul.f32 0.0078125, %v1124_v62  ;;  %v1867_v32 = vadd.f32 %v3115_v15, %v1831_v30  ;;  %v1446_v39 = vadd.f32 1e-05, %v1382_v27 }
 0x25b   :  { %v1712_v55 = vmul.f32 %v2246_v63, %v1445_v35  ;;  %v1220_v26 = vpop.xlane.xlu1 %1219  ;;  %v1706_v50 = vmul.f32 %v2244_v21, %v1705_v47  ;;  %vm1718_vm14 = vweird.f32 %v2246_v63 }
 0x25c   :  { %v1319_v48 = vmul.f32 %v3179_v45, %v3179_v45  ;;  %v1287_v14 = vmul.f32 0.0078125, %v1220_v26  ;;  %1899 = vst [vmem:[#allocation5 + $0xc0] sm:$0xff] %v1867_v32  ;;  %2247 = vrsqrt.f32 %v1446_v39  ;;  %vm1719_vm0 = vmor %vm1717_vm15, %vm1718_vm14  ;;  %vm1727_vm2 = vweird.f32 %v1446_v39 }
 0x25d   :  { %v1713_v38 = vmul.f32 %v2246_v63, %v1712_v55  ;;  %v1710_v23 = vsel %vm1709_vm13, %v2244_v21, %v1706_v50  ;;  %v1414_v21 = vsub.f32 %v2997_v6, %v3172_v61  ;;  %v1415_v6 = vsub.f32 %v3015_v16, %v3179_v45 }
 0x25e   :  { %v1351_v3 = vsub.f32 %v1287_v14, %v1319_v48  ;;  %v1796_v28 = vmul.f32 %v1710_v23, %v1412_v17 }
 0x25f   :  { %v1714_v18 = vmul.f32 0.5, %v1713_v38 }
 0x260   :  { %v1383_v59 = vmax.f32 %v1351_v3, 0.0  ;;  %v1832_v4 = vmul.f32 %v3107_v40, %v1796_v28 }
 0x261   :  { %v1715_v12 = vsub.f32 1.5, %v1714_v18  ;;  %v1126_v52 = vpop.xlane.xlu0 %1125 }
 0x262   :  { %v1447_v0 = vadd.f32 1e-05, %v1383_v59  ;;  %v2248_v36 = vpop.eup %2247  ;;  %v1868_v7 = vadd.f32 %v3115_v15, %v1832_v4  ;;  %v1256_v55 = vmul.f32 0.0078125, %v1126_v52 }
 0x263   :  { %v1716_v8 = vmul.f32 %v2246_v63, %v1715_v12  ;;  %v1722_v34 = vmul.f32 %v2248_v36, %v1446_v39  ;;  %vm1728_vm1 = vweird.f32 %v2248_v36 }
 0x264   :  { %2249 = vrsqrt.f32 %v1447_v0  ;;  %1900 = vst [vmem:[#allocation5 + $0xc8] sm:$0xff] %v1868_v7  ;;  %vm1729_vm3 = vmor %vm1727_vm2, %vm1728_vm1  ;;  %vm1737_vm5 = vweird.f32 %v1447_v0  ;;  %v1320_v38 = vmul.f32 %v1256_v55, %v1256_v55 }
 0x265   :  { %v1720_v11 = vsel %vm1719_vm0, %v2246_v63, %v1716_v8  ;;  %v1723_v22 = vmul.f32 %v2248_v36, %v1722_v34 }
 0x266   :  { %v1797_v1 = vmul.f32 %v1720_v11, %v1413_v20 }
 0x267   :  { %v1724_v13 = vmul.f32 0.5, %v1723_v22 }
 0x268   :  { %v1833_v19 = vmul.f32 %v3107_v40, %v1797_v1 }
 0x269   :  { %v1128_v25 = vpop.xlane.xlu1 %1127  ;;  %v1725_v37 = vsub.f32 1.5, %v1724_v13 }
 0x26a   :  { %v2250_v9 = vpop.eup %2249  ;;  %v1869_v60 = vadd.f32 %v3115_v15, %v1833_v19  ;;  %v3192_v44 = vmul.f32 0.0078125, %v1128_v25 }
 0x26b   :  { %v1732_v51 = vmul.f32 %v2250_v9, %v1447_v0  ;;  %v1224_v57 = vpop.xlane.xlu0 %1223  ;;  %v1726_v31 = vmul.f32 %v2248_v36, %v1725_v37  ;;  %vm1738_vm4 = vweird.f32 %v2250_v9 }
 0x26c   :  { %1901 = vst [vmem:[#allocation5 + $0xd0] sm:$0xff] %v1869_v60  ;;  %v1321_v58 = vmul.f32 %v3192_v44, %v3192_v44  ;;  %v1289_v35 = vmul.f32 0.0078125, %v1224_v57  ;;  %vm1739_vm6 = vmor %vm1737_vm5, %vm1738_vm4  ;;  %v1417_v7 = vsub.f32 %v3049_v29, %v3192_v44 }
 0x26d   :  { %v1733_v56 = vmul.f32 %v2250_v9, %v1732_v51  ;;  %v1730_v46 = vsel %vm1729_vm3, %v2248_v36, %v1726_v31 }
 0x26e   :  { %v1353_v53 = vsub.f32 %v1289_v35, %v1321_v58  ;;  %v1798_v41 = vmul.f32 %v1730_v46, %v1414_v21  ;;  %v1416_v35 = vsub.f32 %v3029_v10, %v1256_v55 }
 0x26f   :  { %v1734_v33 = vmul.f32 0.5, %v1733_v56 }
 0x270   :  { %v1385_v54 = vmax.f32 %v1353_v53, 0.0  ;;  %v1834_v42 = vmul.f32 %v3107_v40, %v1798_v41 }
 0x271   :  { %v1735_v2 = vsub.f32 1.5, %v1734_v33  ;;  %v1130_v5 = vpop.xlane.xlu2 %1129 }
 0x272   :  { %v1449_v49 = vadd.f32 1e-05, %v1385_v54  ;;  %v1258_v43 = vmul.f32 0.0078125, %v1130_v5  ;;  %v1870_v30 = vadd.f32 %v3115_v15, %v1834_v42 }
 0x273   :  { %v1736_v27 = vmul.f32 %v2250_v9, %v1735_v2  ;;  %v1226_v62 = vpop.xlane.xlu1 %1225 }
 0x274   :  { %2251 = vrsqrt.f32 %v1449_v49  ;;  %v1322_v61 = vmul.f32 %v1258_v43, %v1258_v43  ;;  %1902 = vst [vmem:[#allocation5 + $0xd8] sm:$0xff] %v1870_v30  ;;  %v1290_v47 = vmul.f32 0.0078125, %v1226_v62  ;;  %vm1757_vm8 = vweird.f32 %v1449_v49 }
 0x275   :  { %v1740_v63 = vsel %vm1739_vm6, %v2250_v9, %v1736_v27  ;;  %v1418_v29 = vsub.f32 %v3067_v24, %v1258_v43 }
 0x276   :  { %v1799_v32 = vmul.f32 %v1740_v63, %v1415_v6  ;;  %v1354_v39 = vsub.f32 %v1290_v47, %v1322_v61 }
 0x278   :  { %v1835_v26 = vmul.f32 %v3107_v40, %v1799_v32  ;;  %v1386_v50 = vmax.f32 %v1354_v39, 0.0 }
 0x279   :  { %v1222_v48 = vpop.xlane.xlu2 %1221 }
 0x27a   :  { %v2252_v14 = vpop.eup %2251  ;;  %v1871_v17 = vadd.f32 %v3115_v15, %v1835_v26  ;;  %v1288_v23 = vmul.f32 0.0078125, %v1222_v48  ;;  %v1450_v16 = vadd.f32 1e-05, %v1386_v50 }
 0x27b   :  { %v1752_v3 = vmul.f32 %v2252_v14, %v1449_v49  ;;  %vm1758_vm7 = vweird.f32 %v2252_v14 }
 0x27c   :  { %1903 = vst [vmem:[#allocation5 + $0xe0] sm:$0xff] %v1871_v17  ;;  %v1352_v45 = vsub.f32 %v1288_v23, %v1320_v38  ;;  %2253 = vrsqrt.f32 %v1450_v16  ;;  %vm1759_vm9 = vmor %vm1757_vm8, %vm1758_vm7  ;;  %vm1767_vm11 = vweird.f32 %v1450_v16 }
 0x27d   :  { %v1753_v28 = vmul.f32 %v2252_v14, %v1752_v3 }
 0x27e   :  { %v1384_v18 = vmax.f32 %v1352_v45, 0.0 }
 0x27f   :  { %v1754_v59 = vmul.f32 0.5, %v1753_v28 }
 0x280   :  { %v1448_v4 = vadd.f32 1e-05, %v1384_v18 }
 0x281   :  { %v1755_v12 = vsub.f32 1.5, %v1754_v59 }
 0x282   :  { %2255 = vrsqrt.f32 %v1448_v4  ;;  %v2254_v0 = vpop.eup %2253  ;;  %vm1747_vm14 = vweird.f32 %v1448_v4 }
 0x283   :  { %v1756_v36 = vmul.f32 %v2252_v14, %v1755_v12  ;;  %v1762_v8 = vmul.f32 %v2254_v0, %v1450_v16  ;;  %vm1768_vm10 = vweird.f32 %v2254_v0 }
 0x284   :  { %vm1769_vm12 = vmor %vm1767_vm11, %vm1768_vm10 }
 0x285   :  { %v1760_v52 = vsel %vm1759_vm9, %v2252_v14, %v1756_v36  ;;  %v1763_v34 = vmul.f32 %v2254_v0, %v1762_v8 }
 0x286   :  { %v1801_v20 = vmul.f32 %v1760_v52, %v1417_v7 }
 0x287   :  { %v1764_v22 = vmul.f32 0.5, %v1763_v34 }
 0x288   :  { %v2256_v11 = vpop.eup %2255  ;;  %v1837_v1 = vmul.f32 %v3107_v40, %v1801_v20 }
 0x289   :  { %v1742_v19 = vmul.f32 %v2256_v11, %v1448_v4  ;;  %v1765_v25 = vsub.f32 1.5, %v1764_v22  ;;  %vm1748_vm13 = vweird.f32 %v2256_v11 }
 0x28a   :  { %v1873_v13 = vadd.f32 %v3115_v15, %v1837_v1  ;;  %vm1749_vm15 = vmor %vm1747_vm14, %vm1748_vm13 }
 0x28b   :  { %v1743_v9 = vmul.f32 %v2256_v11, %v1742_v19  ;;  %v1766_v60 = vmul.f32 %v2254_v0, %v1765_v25 }
 0x28c   :  { %1905 = vst [vmem:[#allocation5 + $0xf0] sm:$0xff] %v1873_v13 }
 0x28d   :  { %v1744_v37 = vmul.f32 0.5, %v1743_v9  ;;  %v1770_v44 = vsel %vm1769_vm12, %v2254_v0, %v1766_v60 }
 0x28e   :  { %v1802_v51 = vmul.f32 %v1770_v44, %v1418_v29 }
 0x28f   :  { %v1745_v57 = vsub.f32 1.5, %v1744_v37 }
 0x290   :  { %v1838_v31 = vmul.f32 %v3107_v40, %v1802_v51 }
 0x291   :  { %v1746_v58 = vmul.f32 %v2256_v11, %v1745_v57 }
 0x292   :  { %v1874_v21 = vadd.f32 %v3115_v15, %v1838_v31 }
 0x293   :  { %v1750_v56 = vsel %vm1749_vm15, %v2256_v11, %v1746_v58 }
 0x294   :  { %v1800_v46 = vmul.f32 %v1750_v56, %v1416_v35  ;;  %1906 = vst [vmem:[#allocation5 + $0xf8] sm:$0xff] %v1874_v21 }
 0x296   :  { %v1836_v24 = vmul.f32 %v3107_v40, %v1800_v46 }
 0x298   :  { %v1872_v53 = vadd.f32 %v3115_v15, %v1836_v24 }
 0x29a   :  { %1904 = vst [vmem:[#allocation5 + $0xe8] sm:$0xff] %v1872_v53 }
 0x29b   :  { %1919 = dma.vmem_to_hbm [thread:$0]  %s1912_s3, 4096, %s1914_s18, [#allocation4], %s2312_s20, %s2312_s20, %s2313_s21  }
 0x29c   :  { %2309 = dma.done.wait [#allocation4], 4096  }
 0x29d   :  { %2310 = vsyncadd [#allocation4], 4294963200 }
 0x29e   :  { %1924 = vsyncpa [#allocation3], 1 }
 0x29f   :  { %1925 = vsyncpa [#allocation4], 1 }

</bundles_post_ra>
